<compile_context>
chip_gen: v6e
topology: v6e:2x2x1
jax: 0.10.0
libtpu: 0.0.40
codegen_flags: <defaults>
</compile_context>

<pallas_src>
import jax
import jax.numpy as jnp
from jax.experimental import pallas as pl
from jax.experimental.pallas import tpu as pltpu


_DIMS = [(510, 512), (512, 384), (384, 128), (128, 128), (128, 1)]
_K_PAD = 512  # 510 features zero-padded to a multiple of 128


def _round_up(x, m):
    return (x + m - 1) // m * m


def _discriminator_z_kernel(x_ref,
                            w1_ref, b1_ref,
                            w2_ref, b2_ref,
                            w3_ref, b3_ref,
                            w4_ref, b4_ref,
                            w5_ref, b5_ref,
                            o_ref):
    """One batch tile of the full MLP. Weights stay VMEM-resident."""
    # Layers 1-4: bf16 x bf16 MXU matmuls with f32 accumulation; bias + ReLU
    # in f32 on the VPU.
    h = x_ref[...]                                                   # (TB, 512) bf16
    h = jnp.dot(h, w1_ref[...], preferred_element_type=jnp.float32) + b1_ref[...]
    h = jnp.maximum(h, 0.0)
    h = jnp.dot(h.astype(jnp.bfloat16), w2_ref[...],
                preferred_element_type=jnp.float32) + b2_ref[...]
    h = jnp.maximum(h, 0.0)
    h = jnp.dot(h.astype(jnp.bfloat16), w3_ref[...],
                preferred_element_type=jnp.float32) + b3_ref[...]
    h = jnp.maximum(h, 0.0)
    h = jnp.dot(h.astype(jnp.bfloat16), w4_ref[...],
                preferred_element_type=jnp.float32) + b4_ref[...]
    h = jnp.maximum(h, 0.0)
    # Final Linear(128, 1): N=1 matvec would waste 127/128 MXU lanes, so do a
    # broadcast-multiply + lane reduction on the VPU/XLU instead.
    logits = jnp.sum(h * w5_ref[...].astype(jnp.float32),
                     axis=-1, keepdims=True) + b5_ref[...]
    o_ref[...] = jax.nn.sigmoid(logits)


def init_params(key):
    """f32 params matching nn.Linear shapes; weight stored (in, out)."""
    params = []
    for fan_in, fan_out in _DIMS:
        key, kw, kb = jax.random.split(key, 3)
        bound = 1.0 / jnp.sqrt(jnp.float32(fan_in))
        w = jax.random.uniform(kw, (fan_in, fan_out), jnp.float32, -bound, bound)
        b = jax.random.uniform(kb, (1, fan_out), jnp.float32, -bound, bound)
        params.append((w, b))
    return params


def pack_params(params):
    """Pad / cast f32 params into the kernel's layout (bf16 weights, f32 bias)."""
    (w1, b1), (w2, b2), (w3, b3), (w4, b4), (w5, b5) = params
    w1p = jnp.zeros((_K_PAD, 512), jnp.float32).at[:510, :].set(w1)
    return (
        w1p.astype(jnp.bfloat16), b1.reshape(1, 512).astype(jnp.float32),
        w2.astype(jnp.bfloat16),  b2.reshape(1, 384).astype(jnp.float32),
        w3.astype(jnp.bfloat16),  b3.reshape(1, 128).astype(jnp.float32),
        w4.astype(jnp.bfloat16),  b4.reshape(1, 128).astype(jnp.float32),
        # final layer as a (1, 128) row for the VPU reduction
        w5.reshape(1, 128).astype(jnp.bfloat16),
        b5.reshape(1, 1).astype(jnp.float32),
    )


def discriminator_z_forward(x, packed_params, *, max_batch_tile=512):
    """x: anything that squeezes to (B, 510). Returns (B, 1) float32."""
    x2d = jnp.squeeze(x)            # mirrors x.squeeze() in the PyTorch forward
    if x2d.ndim == 1:
        x2d = x2d[None, :]
    B, F = x2d.shape
    assert F == 510, f"expected feature dim 510, got {x2d.shape}"

    # Batch tile: multiple of 8 sublanes, capped so it always fits VMEM.
    tb = min(max_batch_tile, _round_up(B, 8))
    b_pad = _round_up(B, tb)

    # Pad features 510 -> 512 and batch -> b_pad; cast activations to bf16.
    x_p = jnp.zeros((b_pad, _K_PAD), jnp.bfloat16)
    x_p = x_p.at[:B, :510].set(x2d.astype(jnp.bfloat16))

    (w1, b1, w2, b2, w3, b3, w4, b4, w5, b5) = packed_params
    resident = lambda i: (0, 0)     # same block every step -> stays in VMEM

    out = pl.pallas_call(
        _discriminator_z_kernel,
        out_shape=jax.ShapeDtypeStruct((b_pad, 1), jnp.float32),
        grid=(b_pad // tb,),
        in_specs=[
            pl.BlockSpec((tb, _K_PAD), lambda i: (i, 0)),   # x tile (pipelined)
            pl.BlockSpec(w1.shape, resident),
            pl.BlockSpec(b1.shape, resident),
            pl.BlockSpec(w2.shape, resident),
            pl.BlockSpec(b2.shape, resident),
            pl.BlockSpec(w3.shape, resident),
            pl.BlockSpec(b3.shape, resident),
            pl.BlockSpec(w4.shape, resident),
            pl.BlockSpec(b4.shape, resident),
            pl.BlockSpec(w5.shape, resident),
            pl.BlockSpec(b5.shape, resident),
        ],
        out_specs=pl.BlockSpec((tb, 1), lambda i: (i, 0)),
        compiler_params=pltpu.CompilerParams(
            dimension_semantics=("parallel",),       # megacore on v7x
            vmem_limit_bytes=32 * 1024 * 1024,       # fits v5e/v6e/v7x budgets
        ),
    )(x_p, w1, b1, w2, b2, w3, b3, w4, b4, w5, b5)
    return out[:B]


def reference_forward_bf16(x, packed_params):
    """Pure-JAX reference using the exact same padded/bf16 math as the kernel."""
    h = jnp.squeeze(x)
    if h.ndim == 1:
        h = h[None, :]
    (w1, b1, w2, b2, w3, b3, w4, b4, w5, b5) = packed_params
    h = jnp.pad(h.astype(jnp.float32), ((0, 0), (0, _K_PAD - h.shape[1])))
    for w, b in ((w1, b1), (w2, b2), (w3, b3), (w4, b4)):
        h = jnp.maximum(
            jnp.dot(h.astype(jnp.bfloat16), w,
                    preferred_element_type=jnp.float32) + b, 0.0)
    logits = jnp.sum(h * w5.astype(jnp.float32), axis=-1, keepdims=True) + b5
    return jax.nn.sigmoid(logits)


def reference_forward_f32(x, params):
    """Full-precision reference matching the PyTorch module semantics."""
    h = jnp.squeeze(x)
    if h.ndim == 1:
        h = h[None, :]
    h = h.astype(jnp.float32)
    for i, (w, b) in enumerate(params):
        h = h @ w + b
        if i < len(params) - 1:
            h = jnp.maximum(h, 0.0)
    return jax.nn.sigmoid(h)


if __name__ == "__main__":
    key = jax.random.PRNGKey(0)
    key, kx = jax.random.split(key)

    # NCHW-style latent, as the module's squeeze() implies: (B, 510, 1, 1)
    B = 2
    x = jax.random.normal(kx, (B, 510, 1, 1), dtype=jnp.float32)

    params = init_params(key)
    packed = pack_params(params)

    out = discriminator_z_forward(x, packed)
    out = jax.block_until_ready(out)
    assert out.shape == (B, 1), out.shape

    # Tight check against a bit-for-bit equivalent bf16 reference.
    ref_bf16 = reference_forward_bf16(x, packed)
    assert jnp.allclose(out, ref_bf16, atol=1e-3, rtol=1e-3), (out, ref_bf16)

    # Loose check against the f32 PyTorch-equivalent forward (bf16 weight cast
    # perturbs pre-sigmoid logits only slightly).
    ref_f32 = reference_forward_f32(x, params)
    assert jnp.allclose(out, ref_f32, atol=2e-2, rtol=2e-2), (out, ref_f32)

    print("KERNEL_OK")
</pallas_src>

<mosaic_0001>
module attributes {stable_mosaic.version = 11 : i64} {
  func.func @_discriminator_z_kernel(%arg0: i32, %arg1: memref<8x512xbf16, #tpu.memory_space<vmem>>, %arg2: memref<512x512xbf16, #tpu.memory_space<vmem>>, %arg3: memref<1x512xf32, #tpu.memory_space<vmem>>, %arg4: memref<512x384xbf16, #tpu.memory_space<vmem>>, %arg5: memref<1x384xf32, #tpu.memory_space<vmem>>, %arg6: memref<384x128xbf16, #tpu.memory_space<vmem>>, %arg7: memref<1x128xf32, #tpu.memory_space<vmem>>, %arg8: memref<128x128xbf16, #tpu.memory_space<vmem>>, %arg9: memref<1x128xf32, #tpu.memory_space<vmem>>, %arg10: memref<1x128xbf16, #tpu.memory_space<vmem>>, %arg11: memref<1x1xf32, #tpu.memory_space<vmem>>, %arg12: memref<8x1xf32, #tpu.memory_space<vmem>>) attributes {dimension_semantics = [#tpu.dimension_semantics<parallel>], iteration_bounds = array<i64: 1>, scalar_prefetch = 0 : i64, scratch_operands = 0 : i64, tpu.core_type = #tpu.core_type<tc>, window_params = [{transform_indices = @transform_0, window_bounds = array<i64: 8, 512>}, {pipeline_mode = #tpu.pipeline_mode<synchronous>, transform_indices = @transform_1, window_bounds = array<i64: 512, 512>}, {pipeline_mode = #tpu.pipeline_mode<synchronous>, transform_indices = @transform_2, window_bounds = array<i64: 1, 512>}, {pipeline_mode = #tpu.pipeline_mode<synchronous>, transform_indices = @transform_3, window_bounds = array<i64: 512, 384>}, {pipeline_mode = #tpu.pipeline_mode<synchronous>, transform_indices = @transform_4, window_bounds = array<i64: 1, 384>}, {pipeline_mode = #tpu.pipeline_mode<synchronous>, transform_indices = @transform_5, window_bounds = array<i64: 384, 128>}, {pipeline_mode = #tpu.pipeline_mode<synchronous>, transform_indices = @transform_6, window_bounds = array<i64: 1, 128>}, {pipeline_mode = #tpu.pipeline_mode<synchronous>, transform_indices = @transform_7, window_bounds = array<i64: 128, 128>}, {pipeline_mode = #tpu.pipeline_mode<synchronous>, transform_indices = @transform_8, window_bounds = array<i64: 1, 128>}, {pipeline_mode = #tpu.pipeline_mode<synchronous>, transform_indices = @transform_9, window_bounds = array<i64: 1, 128>}, {pipeline_mode = #tpu.pipeline_mode<synchronous>, transform_indices = @transform_10, window_bounds = array<i64: 1, 1>}, {transform_indices = @transform_11, window_bounds = array<i64: 8, 1>}]} {
    %c0 = arith.constant 0 : index
    %c0_0 = arith.constant 0 : index
    %0 = vector.load %arg1[%c0, %c0_0] : memref<8x512xbf16, #tpu.memory_space<vmem>>, vector<8x512xbf16>
    %c0_1 = arith.constant 0 : index
    %c0_2 = arith.constant 0 : index
    %1 = vector.load %arg2[%c0_1, %c0_2] : memref<512x512xbf16, #tpu.memory_space<vmem>>, vector<512x512xbf16>
    %cst = arith.constant dense<0.000000e+00> : vector<8x512xf32>
    %2 = tpu.matmul %0, %1, %cst {dimension_numbers = #tpu.dot_dimension_numbers<[1], [0], [0], [1], [0, 0, 1, 1], [], []>} : vector<8x512xbf16>, vector<512x512xbf16>, vector<8x512xf32> -> vector<8x512xf32>
    %c0_3 = arith.constant 0 : index
    %c0_4 = arith.constant 0 : index
    %3 = vector.load %arg3[%c0_3, %c0_4] : memref<1x512xf32, #tpu.memory_space<vmem>>, vector<1x512xf32>
    %4 = vector.broadcast %3 : vector<1x512xf32> to vector<8x512xf32>
    %5 = arith.addf %2, %4 : vector<8x512xf32>
    %cst_5 = arith.constant 0.000000e+00 : f32
    %6 = vector.broadcast %cst_5 : f32 to vector<8x512xf32>
    %7 = arith.maximumf %5, %6 : vector<8x512xf32>
    %8 = arith.truncf %7 : vector<8x512xf32> to vector<8x512xbf16>
    %c0_6 = arith.constant 0 : index
    %c0_7 = arith.constant 0 : index
    %9 = vector.load %arg4[%c0_6, %c0_7] : memref<512x384xbf16, #tpu.memory_space<vmem>>, vector<512x384xbf16>
    %cst_8 = arith.constant dense<0.000000e+00> : vector<8x384xf32>
    %10 = tpu.matmul %8, %9, %cst_8 {dimension_numbers = #tpu.dot_dimension_numbers<[1], [0], [0], [1], [0, 0, 1, 1], [], []>} : vector<8x512xbf16>, vector<512x384xbf16>, vector<8x384xf32> -> vector<8x384xf32>
    %c0_9 = arith.constant 0 : index
    %c0_10 = arith.constant 0 : index
    %11 = vector.load %arg5[%c0_9, %c0_10] : memref<1x384xf32, #tpu.memory_space<vmem>>, vector<1x384xf32>
    %12 = vector.broadcast %11 : vector<1x384xf32> to vector<8x384xf32>
    %13 = arith.addf %10, %12 : vector<8x384xf32>
    %cst_11 = arith.constant 0.000000e+00 : f32
    %14 = vector.broadcast %cst_11 : f32 to vector<8x384xf32>
    %15 = arith.maximumf %13, %14 : vector<8x384xf32>
    %16 = arith.truncf %15 : vector<8x384xf32> to vector<8x384xbf16>
    %c0_12 = arith.constant 0 : index
    %c0_13 = arith.constant 0 : index
    %17 = vector.load %arg6[%c0_12, %c0_13] : memref<384x128xbf16, #tpu.memory_space<vmem>>, vector<384x128xbf16>
    %cst_14 = arith.constant dense<0.000000e+00> : vector<8x128xf32>
    %18 = tpu.matmul %16, %17, %cst_14 {dimension_numbers = #tpu.dot_dimension_numbers<[1], [0], [0], [1], [0, 0, 1, 1], [], []>} : vector<8x384xbf16>, vector<384x128xbf16>, vector<8x128xf32> -> vector<8x128xf32>
    %c0_15 = arith.constant 0 : index
    %c0_16 = arith.constant 0 : index
    %19 = vector.load %arg7[%c0_15, %c0_16] : memref<1x128xf32, #tpu.memory_space<vmem>>, vector<1x128xf32>
    %20 = vector.broadcast %19 : vector<1x128xf32> to vector<8x128xf32>
    %21 = arith.addf %18, %20 : vector<8x128xf32>
    %cst_17 = arith.constant 0.000000e+00 : f32
    %22 = vector.broadcast %cst_17 : f32 to vector<8x128xf32>
    %23 = arith.maximumf %21, %22 : vector<8x128xf32>
    %24 = arith.truncf %23 : vector<8x128xf32> to vector<8x128xbf16>
    %c0_18 = arith.constant 0 : index
    %c0_19 = arith.constant 0 : index
    %25 = vector.load %arg8[%c0_18, %c0_19] : memref<128x128xbf16, #tpu.memory_space<vmem>>, vector<128x128xbf16>
    %cst_20 = arith.constant dense<0.000000e+00> : vector<8x128xf32>
    %26 = tpu.matmul %24, %25, %cst_20 {dimension_numbers = #tpu.dot_dimension_numbers<[1], [0], [0], [1], [0, 0, 1, 1], [], []>} : vector<8x128xbf16>, vector<128x128xbf16>, vector<8x128xf32> -> vector<8x128xf32>
    %c0_21 = arith.constant 0 : index
    %c0_22 = arith.constant 0 : index
    %27 = vector.load %arg9[%c0_21, %c0_22] : memref<1x128xf32, #tpu.memory_space<vmem>>, vector<1x128xf32>
    %28 = vector.broadcast %27 : vector<1x128xf32> to vector<8x128xf32>
    %29 = arith.addf %26, %28 : vector<8x128xf32>
    %cst_23 = arith.constant 0.000000e+00 : f32
    %30 = vector.broadcast %cst_23 : f32 to vector<8x128xf32>
    %31 = arith.maximumf %29, %30 : vector<8x128xf32>
    %c0_24 = arith.constant 0 : index
    %c0_25 = arith.constant 0 : index
    %32 = vector.load %arg10[%c0_24, %c0_25] : memref<1x128xbf16, #tpu.memory_space<vmem>>, vector<1x128xbf16>
    %33 = arith.extf %32 : vector<1x128xbf16> to vector<1x128xf32>
    %34 = vector.broadcast %33 : vector<1x128xf32> to vector<8x128xf32>
    %35 = arith.mulf %31, %34 : vector<8x128xf32>
    %cst_26 = arith.constant dense<0.000000e+00> : vector<8xf32>
    %36 = vector.multi_reduction <add>, %35, %cst_26 [1] : vector<8x128xf32> to vector<8xf32>
    %37 = vector.shape_cast %36 : vector<8xf32> to vector<8x1xf32>
    %c0_27 = arith.constant 0 : index
    %c0_28 = arith.constant 0 : index
    %38 = vector.load %arg11[%c0_27, %c0_28] : memref<1x1xf32, #tpu.memory_space<vmem>>, vector<1x1xf32>
    %39 = vector.broadcast %38 : vector<1x1xf32> to vector<8x1xf32>
    %40 = arith.addf %37, %39 : vector<8x1xf32>
    %41 = arith.negf %40 : vector<8x1xf32>
    %42 = math.exp %41 : vector<8x1xf32>
    %cst_29 = arith.constant 1.000000e+00 : f32
    %43 = vector.broadcast %cst_29 : f32 to vector<8x1xf32>
    %44 = arith.addf %43, %42 : vector<8x1xf32>
    %45 = arith.divf %43, %44 : vector<8x1xf32>
    %c0_30 = arith.constant 0 : index
    %c0_31 = arith.constant 0 : index
    %46 = vector.load %arg12[%c0_30, %c0_31] : memref<8x1xf32, #tpu.memory_space<vmem>>, vector<8x1xf32>
    tpu.vector_store %arg12[%c0_30, %c0_31], %45 {strides = array<i32>} : memref<8x1xf32, #tpu.memory_space<vmem>>, vector<8x1xf32>,
    return
  }
  func.func @transform_0(%arg0: i32) -> (i32, i32) {
    %c0_i32 = arith.constant 0 : i32
    %c0_i32_0 = arith.constant 0 : i32
    return %arg0, %c0_i32 : i32, i32
  }
  func.func @transform_1(%arg0: i32) -> (i32, i32) {
    %c0_i32 = arith.constant 0 : i32
    %c0_i32_0 = arith.constant 0 : i32
    %c0_i32_1 = arith.constant 0 : i32
    return %c0_i32, %c0_i32_0 : i32, i32
  }
  func.func @transform_2(%arg0: i32) -> (i32, i32) {
    %c0_i32 = arith.constant 0 : i32
    %c0_i32_0 = arith.constant 0 : i32
    %c0_i32_1 = arith.constant 0 : i32
    return %c0_i32, %c0_i32_0 : i32, i32
  }
  func.func @transform_3(%arg0: i32) -> (i32, i32) {
    %c0_i32 = arith.constant 0 : i32
    %c0_i32_0 = arith.constant 0 : i32
    %c0_i32_1 = arith.constant 0 : i32
    return %c0_i32, %c0_i32_0 : i32, i32
  }
  func.func @transform_4(%arg0: i32) -> (i32, i32) {
    %c0_i32 = arith.constant 0 : i32
    %c0_i32_0 = arith.constant 0 : i32
    %c0_i32_1 = arith.constant 0 : i32
    return %c0_i32, %c0_i32_0 : i32, i32
  }
  func.func @transform_5(%arg0: i32) -> (i32, i32) {
    %c0_i32 = arith.constant 0 : i32
    %c0_i32_0 = arith.constant 0 : i32
    %c0_i32_1 = arith.constant 0 : i32
    return %c0_i32, %c0_i32_0 : i32, i32
  }
  func.func @transform_6(%arg0: i32) -> (i32, i32) {
    %c0_i32 = arith.constant 0 : i32
    %c0_i32_0 = arith.constant 0 : i32
    %c0_i32_1 = arith.constant 0 : i32
    return %c0_i32, %c0_i32_0 : i32, i32
  }
  func.func @transform_7(%arg0: i32) -> (i32, i32) {
    %c0_i32 = arith.constant 0 : i32
    %c0_i32_0 = arith.constant 0 : i32
    %c0_i32_1 = arith.constant 0 : i32
    return %c0_i32, %c0_i32_0 : i32, i32
  }
  func.func @transform_8(%arg0: i32) -> (i32, i32) {
    %c0_i32 = arith.constant 0 : i32
    %c0_i32_0 = arith.constant 0 : i32
    %c0_i32_1 = arith.constant 0 : i32
    return %c0_i32, %c0_i32_0 : i32, i32
  }
  func.func @transform_9(%arg0: i32) -> (i32, i32) {
    %c0_i32 = arith.constant 0 : i32
    %c0_i32_0 = arith.constant 0 : i32
    %c0_i32_1 = arith.constant 0 : i32
    return %c0_i32, %c0_i32_0 : i32, i32
  }
  func.func @transform_10(%arg0: i32) -> (i32, i32) {
    %c0_i32 = arith.constant 0 : i32
    %c0_i32_0 = arith.constant 0 : i32
    %c0_i32_1 = arith.constant 0 : i32
    return %c0_i32, %c0_i32_0 : i32, i32
  }
  func.func @transform_11(%arg0: i32) -> (i32, i32) {
    %c0_i32 = arith.constant 0 : i32
    %c0_i32_0 = arith.constant 0 : i32
    return %arg0, %c0_i32 : i32, i32
  }
}

</mosaic_0001>

<bundles_post_ra>
// kernel: tpu_custom_call.1
= control target key start
LH: loop header
LB: loop body
LE: loop exit
PB: predicated region body
PF: predicated region fallthrough
CT: control target
= control target key end

     0   :  { %s3368_s0 = inlined_call_operand.hbm [shape: bf16[8,512], index: 0, kind: input, shape index: {}]   ;;  %s3369_s1 = inlined_call_operand.hbm [shape: bf16[512,512], index: 1, kind: input, shape index: {}]   ;;  %s3370_s2 = inlined_call_operand.vmem [shape: f32[1,512], index: 2, kind: input, shape index: {}]   ;;  %s3371_s3 = inlined_call_operand.hbm [shape: bf16[512,384], index: 3, kind: input, shape index: {}]   ;;  %s3372_s4 = inlined_call_operand.vmem [shape: f32[1,384], index: 4, kind: input, shape index: {}]   ;;  %s3373_s5 = inlined_call_operand.hbm [shape: bf16[384,128], index: 5, kind: input, shape index: {}]   ;;  %s3374_s6 = inlined_call_operand.vmem [shape: f32[1,128], index: 6, kind: input, shape index: {}]   ;;  %s3375_s7 = inlined_call_operand.hbm [shape: bf16[128,128], index: 7, kind: input, shape index: {}]   ;;  %s3376_s8 = inlined_call_operand.vmem [shape: f32[1,128], index: 8, kind: input, shape index: {}]   ;;  %s3377_s9 = inlined_call_operand.vmem [shape: bf16[1,128], index: 9, kind: input, shape index: {}]   ;;  %s3378_s10 = inlined_call_operand.<no memory space> [shape: f32[1,1], index: 10, kind: input, shape index: {}]   ;;  %s3379_s11 = inlined_call_operand.vmem [shape: f32[8,1], index: 11, kind: output, shape index: {}]  }
   0x1   :  { %v16_v0 = vstv %s3378_s10 }
   0x2   :  { %17 = vst [vmem:[#allocation2] sm:$0x1] %v16_v0 }
   0x3   :  { %18 = vsyncpa [#allocation4], 0 }
   0x4   :  { %19 = vsyncpa [#allocation6], 0 }
   0x5   :  { %20 = vsyncpa [#allocation9], 0  ;;  %s3202_s19 = smov [#allocation5]  }
   0x6   :  { %s36_s20 = sshll.u32 %s3202_s19, 4  ;;  %s37_s20 = int_to_ptr.vmem [resolvable:$true] %s36_s20 }
   0x7   :  { %s3104_s21 = scalar_lea.vmem %s37_s20, 16384  ;;  %p3109_p1 = scmp.lt.s32.totalorder %s37_s20, %s37_s20 }
   0x8   :  { %p3105_p0 = scmp.ne.s32.totalorder %s37_s20, %s3104_s21  ;;  %p3110_p2 = scmp.lt.s32.totalorder %s3104_s21, %s3104_s21 }
   0xa   :  { %p3111_p3 = por %p3110_p2, %p3109_p1 }
   0xc   :  { %p3112_p4 = pnand %p3111_p3, %p3105_p0 }
   0xe   :  { %3115 = shalt.err (!%p3112_p4)
}
   0xf   :  { %s3203_s22 = smov 256   ;;  %s3204_s23 = smov 16  }
  0x10   :  { %42 = dma.hbm_to_vmem [thread:$0]  %s3369_s1, 16384, %s37_s20, [#allocation6], %s3203_s22, %s3203_s22, %s3204_s23  }
  0x11   :  { %s3205_s10 = smov [#allocation8]  }
  0x12   :  { %s64_s26 = sshll.u32 %s3205_s10, 4  ;;  %s65_s26 = int_to_ptr.vmem [resolvable:$true] %s64_s26 }
  0x13   :  { %s3124_s27 = scalar_lea.vmem %s65_s26, 3072  ;;  %p3129_p6 = scmp.lt.s32.totalorder %s65_s26, %s65_s26 }
  0x14   :  { %p3125_p5 = scmp.ne.s32.totalorder %s65_s26, %s3124_s27  ;;  %p3130_p7 = scmp.lt.s32.totalorder %s3124_s27, %s3124_s27 }
  0x16   :  { %p3131_p8 = por %p3130_p7, %p3129_p6 }
  0x18   :  { %p3132_p9 = pnand %p3131_p8, %p3125_p5 }
  0x1a   :  { %3135 = shalt.err (!%p3132_p9)
}
  0x1b   :  { %s3206_s28 = smov 64   ;;  %s3207_s29 = smov 4  }
  0x1c   :  { %70 = dma.hbm_to_vmem [thread:$0]  %s3373_s5, 3072, %s65_s26, [#allocation9], %s3206_s28, %s3206_s28, %s3207_s29  }
  0x1d   :  { %s3208_s1 = smov [#allocation3]   ;;  %s3209_s14 = smov [#allocation7]  }
  0x1e   :  { %s27_s13 = sshll.u32 %s3208_s1, 4  ;;  %s50_s15 = sshll.u32 %s3209_s14, 4  ;;  %s28_s13 = int_to_ptr.vmem [resolvable:$true] %s27_s13  ;;  %s51_s15 = int_to_ptr.vmem [resolvable:$true] %s50_s15 }
  0x1f   :  { %s3144_s16 = scalar_lea.vmem %s28_s13, 256  ;;  %p3149_p11 = scmp.lt.s32.totalorder %s28_s13, %s28_s13 }
  0x20   :  { %p3145_p10 = scmp.ne.s32.totalorder %s28_s13, %s3144_s16  ;;  %p3150_p12 = scmp.lt.s32.totalorder %s3144_s16, %s3144_s16 }
  0x22   :  { %p3151_p13 = por %p3150_p12, %p3149_p11 }
  0x24   :  { %p3152_p0 = pnand %p3151_p13, %p3145_p10 }
  0x26   :  { %3155 = shalt.err (!%p3152_p0)
}
  0x27   :  { %30 = dma.hbm_to_vmem [thread:$0]  %s3368_s0, 256, %s28_s13, [#allocation4]  }
  0x28   :  { %s3164_s19 = scalar_lea.vmem %s51_s15, 12288  ;;  %p3169_p2 = scmp.lt.s32.totalorder %s51_s15, %s51_s15 }
  0x29   :  { %p3165_p1 = scmp.ne.s32.totalorder %s51_s15, %s3164_s19  ;;  %p3170_p3 = scmp.lt.s32.totalorder %s3164_s19, %s3164_s19 }
  0x2b   :  { %p3171_p4 = por %p3170_p3, %p3169_p2 }
  0x2d   :  { %p3172_p5 = pnand %p3171_p4, %p3165_p1 }
  0x2f   :  { %3175 = shalt.err (!%p3172_p5)
}
  0x30   :  { %s3210_s5 = smov 192   ;;  %s3211_s20 = smov 12  }
  0x31   :  { %56 = dma.hbm_to_vmem [thread:$0]  %s3371_s3, 12288, %s51_s15, [#allocation6], %s3210_s5, %s3210_s5, %s3211_s20  }
  0x32   :  { %s3212_s23 = smov [#allocation10]  }
  0x33   :  { %s78_s24 = sshll.u32 %s3212_s23, 4  ;;  %s79_s24 = int_to_ptr.vmem [resolvable:$true] %s78_s24 }
  0x34   :  { %s3184_s25 = scalar_lea.vmem %s79_s24, 1024  ;;  %p3189_p7 = scmp.lt.s32.totalorder %s79_s24, %s79_s24 }
  0x35   :  { %p3185_p6 = scmp.ne.s32.totalorder %s79_s24, %s3184_s25  ;;  %p3190_p8 = scmp.lt.s32.totalorder %s3184_s25, %s3184_s25 }
  0x37   :  { %p3191_p9 = por %p3190_p8, %p3189_p7 }
  0x39   :  { %p3192_p10 = pnand %p3191_p9, %p3185_p6 }
  0x3b   :  { %3195 = shalt.err (!%p3192_p10)
}
  0x3c   :  { %84 = dma.hbm_to_vmem [thread:$0]  %s3375_s7, 1024, %s79_s24, [#allocation9], %s3206_s28, %s3206_s28, %s3207_s29  }
  0x3d   :  { %3196 = dma.done.wait [#allocation4], 256  }
  0x3e   :  { %3197 = vsyncadd [#allocation4], 4294967040 }
  0x3f   :  { %3198 = dma.done.wait [#allocation6], 28672  }
  0x40   :  { %3199 = vsyncadd [#allocation6], 4294938624 }
  0x41   :  { %3200 = dma.done.wait [#allocation9], 4096  }
  0x42   :  { %3201 = vsyncadd [#allocation9], 4294963200  ;;  %v2736_v1 = vld [vmem:[#allocation5 + $0xe4] ss:$16 sps:$4 sm:$0xff]   ;;  %v2740_v3 = vld [vmem:[#allocation5 + $0xe0] ss:$16 sps:$4 sm:$0xff]  }
  0x43   :  { %v2738_v2 = vld [vmem:[#allocation5 + $0x2e4] ss:$16 sps:$4 sm:$0xff]   ;;  %913 = vmatprep.subr.bf16.mxu0 %v2736_v1  ;;  %v2741_v4 = vld [vmem:[#allocation5 + $0x2e0] ss:$16 sps:$4 sm:$0xff]   ;;  %v108_v49 = vld [vmem:[#allocation3 + $0x8] sm:$0xff]  ;;  %vm3214_vm0 = vmmov 0  }
  0x44   :  { %954 = vmatprep.subr.bf16.mxu1 %v2738_v2  ;;  %v2742_v5 = vld [vmem:[#allocation5 + $0xc4] ss:$16 sps:$4 sm:$0xff]   ;;  %914 = vmatpush1.bf16.msra.mxu0 %v2740_v3  ;;  %v2746_v7 = vld [vmem:[#allocation5 + $0xc0] ss:$16 sps:$4 sm:$0xff]   ;;  %v2338_v52 = vcombine.high %v108_v49, %v108_v49  ;;  %vm2326_vm1 = vcmask 7168  }
  0x45   :  { %955 = vmatpush1.bf16.msra.mxu1 %v2741_v4  ;;  %v2744_v6 = vld [vmem:[#allocation5 + $0x2c4] ss:$16 sps:$4 sm:$0xff]   ;;  %915 = vmatprep.subr.bf16.mxu0 %v2742_v5  ;;  %v2747_v8 = vld [vmem:[#allocation5 + $0x2c0] ss:$16 sps:$4 sm:$0xff]   ;;  %v2838_v5 = vld [vmem:[#allocation5 + $0xec] ss:$16 sps:$4 sm:$0xff]  }
  0x46   :  { %956 = vmatprep.subr.bf16.mxu1 %v2744_v6  ;;  %v2748_v9 = vld [vmem:[#allocation5 + $0xa4] ss:$16 sps:$4 sm:$0xff]   ;;  %v2752_v11 = vld [vmem:[#allocation5 + $0xa0] ss:$16 sps:$4 sm:$0xff]   ;;  %986 = vmatprep.mubr.bf16.mxu1 %v2338_v52  ;;  %v2841_v6 = vld [vmem:[#allocation5 + $0x2ec] ss:$16 sps:$4 sm:$0xff]  }
  0x47   :  { %v2750_v10 = vld [vmem:[#allocation5 + $0x2a4] ss:$16 sps:$4 sm:$0xff]   ;;  %v2753_v12 = vld [vmem:[#allocation5 + $0x2a0] ss:$16 sps:$4 sm:$0xff]  }
  0x48   :  { %916 = vmatpush1.bf16.msra.mxu0 %v2746_v7  ;;  %v2754_v13 = vld [vmem:[#allocation5 + $0x84] ss:$16 sps:$4 sm:$0xff]   ;;  %v2758_v15 = vld [vmem:[#allocation5 + $0x80] ss:$16 sps:$4 sm:$0xff]  }
  0x49   :  { %957 = vmatpush1.bf16.msra.mxu1 %v2747_v8  ;;  %917 = vmatprep.subr.bf16.mxu0 %v2748_v9  ;;  %v2756_v14 = vld [vmem:[#allocation5 + $0x284] ss:$16 sps:$4 sm:$0xff]   ;;  %v2759_v16 = vld [vmem:[#allocation5 + $0x280] ss:$16 sps:$4 sm:$0xff]   ;;  %v3304_v8 = vcombine.low %v108_v49, %v108_v49  ;;  %v2836_v9 = vld [vmem:[#allocation5 + $0xe8] ss:$16 sps:$4 sm:$0xff]  }
  0x4a   :  { %958 = vmatprep.subr.bf16.mxu1 %v2750_v10  ;;  %v2760_v17 = vld [vmem:[#allocation5 + $0x64] ss:$16 sps:$4 sm:$0xff]   ;;  %v2764_v19 = vld [vmem:[#allocation5 + $0x60] ss:$16 sps:$4 sm:$0xff]   ;;  %v2839_v10 = vld [vmem:[#allocation5 + $0x2e8] ss:$16 sps:$4 sm:$0xff]  }
  0x4b   :  { %v2762_v18 = vld [vmem:[#allocation5 + $0x264] ss:$16 sps:$4 sm:$0xff]   ;;  %v2765_v20 = vld [vmem:[#allocation5 + $0x260] ss:$16 sps:$4 sm:$0xff]   ;;  %v2896_v49 = vld [vmem:[#allocation5 + $0x1a8] ss:$16 sps:$4 sm:$0xff]  }
  0x4c   :  { %918 = vmatpush1.bf16.msra.mxu0 %v2752_v11  ;;  %v2766_v21 = vld [vmem:[#allocation5 + $0x44] ss:$16 sps:$4 sm:$0xff]   ;;  %v2770_v23 = vld [vmem:[#allocation5 + $0x40] ss:$16 sps:$4 sm:$0xff]   ;;  %v2844_v11 = vld [vmem:[#allocation5 + $0xcc] ss:$16 sps:$4 sm:$0xff]  }
  0x4d   :  { %959 = vmatpush1.bf16.msra.mxu1 %v2753_v12  ;;  %919 = vmatprep.subr.bf16.mxu0 %v2754_v13  ;;  %v2768_v22 = vld [vmem:[#allocation5 + $0x244] ss:$16 sps:$4 sm:$0xff]   ;;  %v2771_v24 = vld [vmem:[#allocation5 + $0x240] ss:$16 sps:$4 sm:$0xff]   ;;  %v2847_v12 = vld [vmem:[#allocation5 + $0x2cc] ss:$16 sps:$4 sm:$0xff]  }
  0x4e   :  { %960 = vmatprep.subr.bf16.mxu1 %v2756_v14  ;;  %v2772_v25 = vld [vmem:[#allocation5 + $0x24] ss:$16 sps:$4 sm:$0xff]   ;;  %v2776_v27 = vld [vmem:[#allocation5 + $0x20] ss:$16 sps:$4 sm:$0xff]   ;;  %v2842_v13 = vld [vmem:[#allocation5 + $0xc8] ss:$16 sps:$4 sm:$0xff]  }
  0x4f   :  { %v2774_v26 = vld [vmem:[#allocation5 + $0x224] ss:$16 sps:$4 sm:$0xff]   ;;  %v2777_v28 = vld [vmem:[#allocation5 + $0x220] ss:$16 sps:$4 sm:$0xff]   ;;  %v2845_v14 = vld [vmem:[#allocation5 + $0x2c8] ss:$16 sps:$4 sm:$0xff]  }
  0x50   :  { %920 = vmatpush1.bf16.msra.mxu0 %v2758_v15  ;;  %v2778_v29 = vld [vmem:[#allocation5 + $0x4] ss:$16 sps:$4 sm:$0xff]   ;;  %v2782_v31 = vld [vmem:[#allocation5] ss:$16 sps:$4 sm:$0xff]   ;;  %v2850_v15 = vld [vmem:[#allocation5 + $0xac] ss:$16 sps:$4 sm:$0xff]  }
  0x51   :  { %961 = vmatpush1.bf16.msra.mxu1 %v2759_v16  ;;  %921 = vmatprep.subr.bf16.mxu0 %v2760_v17  ;;  %v2780_v30 = vld [vmem:[#allocation5 + $0x204] ss:$16 sps:$4 sm:$0xff]   ;;  %v2783_v32 = vld [vmem:[#allocation5 + $0x200] ss:$16 sps:$4 sm:$0xff]   ;;  %v2853_v16 = vld [vmem:[#allocation5 + $0x2ac] ss:$16 sps:$4 sm:$0xff]  }
  0x52   :  { %962 = vmatprep.subr.bf16.mxu1 %v2762_v18  ;;  %v2784_v33 = vld [vmem:[#allocation5 + $0x1e4] ss:$16 sps:$4 sm:$0xff]   ;;  %v2788_v35 = vld [vmem:[#allocation5 + $0x1e0] ss:$16 sps:$4 sm:$0xff]   ;;  %v2848_v17 = vld [vmem:[#allocation5 + $0xa8] ss:$16 sps:$4 sm:$0xff]  }
  0x53   :  { %v2786_v34 = vld [vmem:[#allocation5 + $0x3e4] ss:$16 sps:$4 sm:$0xff]   ;;  %v2789_v36 = vld [vmem:[#allocation5 + $0x3e0] ss:$16 sps:$4 sm:$0xff]   ;;  %v2851_v18 = vld [vmem:[#allocation5 + $0x2a8] ss:$16 sps:$4 sm:$0xff]  }
  0x54   :  { %922 = vmatpush1.bf16.msra.mxu0 %v2764_v19  ;;  %v2790_v37 = vld [vmem:[#allocation5 + $0x1c4] ss:$16 sps:$4 sm:$0xff]   ;;  %v2794_v39 = vld [vmem:[#allocation5 + $0x1c0] ss:$16 sps:$4 sm:$0xff]   ;;  %v2856_v19 = vld [vmem:[#allocation5 + $0x8c] ss:$16 sps:$4 sm:$0xff]  }
  0x55   :  { %963 = vmatpush1.bf16.msra.mxu1 %v2765_v20  ;;  %923 = vmatprep.subr.bf16.mxu0 %v2766_v21  ;;  %v2792_v38 = vld [vmem:[#allocation5 + $0x3c4] ss:$16 sps:$4 sm:$0xff]   ;;  %v2795_v40 = vld [vmem:[#allocation5 + $0x3c0] ss:$16 sps:$4 sm:$0xff]   ;;  %v2859_v20 = vld [vmem:[#allocation5 + $0x28c] ss:$16 sps:$4 sm:$0xff]  }
  0x56   :  { %964 = vmatprep.subr.bf16.mxu1 %v2768_v22  ;;  %v2796_v41 = vld [vmem:[#allocation5 + $0x1a4] ss:$16 sps:$4 sm:$0xff]   ;;  %v2800_v43 = vld [vmem:[#allocation5 + $0x1a0] ss:$16 sps:$4 sm:$0xff]   ;;  %v2854_v21 = vld [vmem:[#allocation5 + $0x88] ss:$16 sps:$4 sm:$0xff]  }
  0x57   :  { %v2798_v42 = vld [vmem:[#allocation5 + $0x3a4] ss:$16 sps:$4 sm:$0xff]   ;;  %v2801_v44 = vld [vmem:[#allocation5 + $0x3a0] ss:$16 sps:$4 sm:$0xff]   ;;  %v2857_v22 = vld [vmem:[#allocation5 + $0x288] ss:$16 sps:$4 sm:$0xff]  }
  0x58   :  { %924 = vmatpush1.bf16.msra.mxu0 %v2770_v23  ;;  %v2802_v45 = vld [vmem:[#allocation5 + $0x184] ss:$16 sps:$4 sm:$0xff]   ;;  %v2806_v50 = vld [vmem:[#allocation5 + $0x180] ss:$16 sps:$4 sm:$0xff]   ;;  %v2862_v23 = vld [vmem:[#allocation5 + $0x6c] ss:$16 sps:$4 sm:$0xff]  }
  0x59   :  { %965 = vmatpush1.bf16.msra.mxu1 %v2771_v24  ;;  %925 = vmatprep.subr.bf16.mxu0 %v2772_v25  ;;  %v2804_v46 = vld [vmem:[#allocation5 + $0x384] ss:$16 sps:$4 sm:$0xff]   ;;  %v2807_v51 = vld [vmem:[#allocation5 + $0x380] ss:$16 sps:$4 sm:$0xff]   ;;  %v2865_v24 = vld [vmem:[#allocation5 + $0x26c] ss:$16 sps:$4 sm:$0xff]  }
  0x5a   :  { %966 = vmatprep.subr.bf16.mxu1 %v2774_v26  ;;  %v107_v47 = vld [vmem:[#allocation3] sm:$0xff]  ;;  %v2860_v25 = vld [vmem:[#allocation5 + $0x68] ss:$16 sps:$4 sm:$0xff]  }
  0x5b   :  { %v3299_v48 = vcombine.high %v107_v47, %v107_v47  ;;  %v2808_v53 = vld [vmem:[#allocation5 + $0x164] ss:$16 sps:$4 sm:$0xff]   ;;  %v2812_v55 = vld [vmem:[#allocation5 + $0x160] ss:$16 sps:$4 sm:$0xff]   ;;  %v3302_v7 = vcombine.low %v107_v47, %v107_v47  ;;  %v2863_v26 = vld [vmem:[#allocation5 + $0x268] ss:$16 sps:$4 sm:$0xff]  }
  0x5c   :  { %926 = vmatpush1.bf16.msra.mxu0 %v2776_v27  ;;  %v2810_v54 = vld [vmem:[#allocation5 + $0x364] ss:$16 sps:$4 sm:$0xff]   ;;  %v2813_v56 = vld [vmem:[#allocation5 + $0x360] ss:$16 sps:$4 sm:$0xff]   ;;  %v2868_v27 = vld [vmem:[#allocation5 + $0x4c] ss:$16 sps:$4 sm:$0xff]  }
  0x5d   :  { %967 = vmatpush1.bf16.msra.mxu1 %v2777_v28  ;;  %927 = vmatprep.subr.bf16.mxu0 %v2778_v29  ;;  %v2814_v57 = vld [vmem:[#allocation5 + $0x144] ss:$16 sps:$4 sm:$0xff]   ;;  %v2818_v59 = vld [vmem:[#allocation5 + $0x140] ss:$16 sps:$4 sm:$0xff]   ;;  %v2871_v28 = vld [vmem:[#allocation5 + $0x24c] ss:$16 sps:$4 sm:$0xff]  }
  0x5e   :  { %968 = vmatprep.subr.bf16.mxu1 %v2780_v30  ;;  %945 = vmatprep.mubr.bf16.mxu0 %v3299_v48  ;;  %v2816_v58 = vld [vmem:[#allocation5 + $0x344] ss:$16 sps:$4 sm:$0xff]   ;;  %v2819_v60 = vld [vmem:[#allocation5 + $0x340] ss:$16 sps:$4 sm:$0xff]   ;;  %v2866_v29 = vld [vmem:[#allocation5 + $0x48] ss:$16 sps:$4 sm:$0xff]  }
  0x5f   :  { %v2820_v61 = vld [vmem:[#allocation5 + $0x124] ss:$16 sps:$4 sm:$0xff]   ;;  %v2824_v63 = vld [vmem:[#allocation5 + $0x120] ss:$16 sps:$4 sm:$0xff]   ;;  %v2869_v30 = vld [vmem:[#allocation5 + $0x248] ss:$16 sps:$4 sm:$0xff]  }
  0x60   :  { %928 = vmatpush1.bf16.msra.mxu0 %v2782_v31  ;;  %v2822_v62 = vld [vmem:[#allocation5 + $0x324] ss:$16 sps:$4 sm:$0xff]   ;;  %v2825_v0 = vld [vmem:[#allocation5 + $0x320] ss:$16 sps:$4 sm:$0xff]   ;;  %v2874_v31 = vld [vmem:[#allocation5 + $0x2c] ss:$16 sps:$4 sm:$0xff]  }
  0x61   :  { %969 = vmatpush1.bf16.msra.mxu1 %v2783_v32  ;;  %929 = vmatprep.subr.bf16.mxu0 %v2784_v33  ;;  %v2826_v1 = vld [vmem:[#allocation5 + $0x104] ss:$16 sps:$4 sm:$0xff]   ;;  %v2830_v3 = vld [vmem:[#allocation5 + $0x100] ss:$16 sps:$4 sm:$0xff]   ;;  %v2877_v32 = vld [vmem:[#allocation5 + $0x22c] ss:$16 sps:$4 sm:$0xff]  }
  0x62   :  { %970 = vmatprep.subr.bf16.mxu1 %v2786_v34  ;;  %v2828_v2 = vld [vmem:[#allocation5 + $0x304] ss:$16 sps:$4 sm:$0xff]   ;;  %v2831_v4 = vld [vmem:[#allocation5 + $0x300] ss:$16 sps:$4 sm:$0xff]   ;;  %v2872_v33 = vld [vmem:[#allocation5 + $0x28] ss:$16 sps:$4 sm:$0xff]  }
  0x63   :  { %v2875_v34 = vld [vmem:[#allocation5 + $0x228] ss:$16 sps:$4 sm:$0xff]   ;;  %v2898_v47 = vld [vmem:[#allocation5 + $0x1ac] ss:$16 sps:$4 sm:$0xff]  }
  0x64   :  { %930 = vmatpush2.bf16.msra.mxu0 %v2788_v35  ;;  %v2880_v35 = vld [vmem:[#allocation5 + $0xc] ss:$16 sps:$4 sm:$0xff]  }
  0x65   :  { %971 = vmatpush2.bf16.msra.mxu1 %v2789_v36  ;;  %931 = vmatprep.subr.bf16.mxu0 %v2790_v37  ;;  %v2883_v36 = vld [vmem:[#allocation5 + $0x20c] ss:$16 sps:$4 sm:$0xff]   ;;  %v2878_v37 = vld [vmem:[#allocation5 + $0x8] ss:$16 sps:$4 sm:$0xff]  }
  0x66   :  { %972 = vmatprep.subr.bf16.mxu1 %v2792_v38  ;;  %v2881_v38 = vld [vmem:[#allocation5 + $0x208] ss:$16 sps:$4 sm:$0xff]  }
  0x68   :  { %932 = vmatpush2.bf16.msra.mxu0 %v2794_v39  ;;  %v2886_v39 = vld [vmem:[#allocation5 + $0x1ec] ss:$16 sps:$4 sm:$0xff]  }
  0x69   :  { %973 = vmatpush2.bf16.msra.mxu1 %v2795_v40  ;;  %933 = vmatprep.subr.bf16.mxu0 %v2796_v41  ;;  %v2889_v40 = vld [vmem:[#allocation5 + $0x3ec] ss:$16 sps:$4 sm:$0xff]   ;;  %v2884_v41 = vld [vmem:[#allocation5 + $0x1e8] ss:$16 sps:$4 sm:$0xff]  }
  0x6a   :  { %974 = vmatprep.subr.bf16.mxu1 %v2798_v42  ;;  %v2887_v42 = vld [vmem:[#allocation5 + $0x3e8] ss:$16 sps:$4 sm:$0xff]  }
  0x6c   :  { %934 = vmatpush2.bf16.msra.mxu0 %v2800_v43  ;;  %v2892_v43 = vld [vmem:[#allocation5 + $0x1cc] ss:$16 sps:$4 sm:$0xff]  }
  0x6d   :  { %975 = vmatpush2.bf16.msra.mxu1 %v2801_v44  ;;  %935 = vmatprep.subr.bf16.mxu0 %v2802_v45  ;;  %v2895_v44 = vld [vmem:[#allocation5 + $0x3cc] ss:$16 sps:$4 sm:$0xff]   ;;  %v2890_v45 = vld [vmem:[#allocation5 + $0x1c8] ss:$16 sps:$4 sm:$0xff]  }
  0x6e   :  { %976 = vmatprep.subr.bf16.mxu1 %v2804_v46  ;;  %v2893_v46 = vld [vmem:[#allocation5 + $0x3c8] ss:$16 sps:$4 sm:$0xff]  }
  0x70   :  { %936 = vmatpush2.bf16.msra.mxu0 %v2806_v50  ;;  %v2899_v50 = vld [vmem:[#allocation5 + $0x3a8] ss:$16 sps:$4 sm:$0xff]  }
  0x71   :  { %977 = vmatpush2.bf16.msra.mxu1 %v2807_v51  ;;  %937 = vmatprep.subr.bf16.mxu0 %v2808_v53  ;;  %v2904_v51 = vld [vmem:[#allocation5 + $0x18c] ss:$16 sps:$4 sm:$0xff]   ;;  %v2902_v53 = vld [vmem:[#allocation5 + $0x188] ss:$16 sps:$4 sm:$0xff]  }
  0x72   :  { %978 = vmatprep.subr.bf16.mxu1 %v2810_v54  ;;  %v2905_v54 = vld [vmem:[#allocation5 + $0x388] ss:$16 sps:$4 sm:$0xff]  }
  0x74   :  { %938 = vmatpush2.bf16.msra.mxu0 %v2812_v55  ;;  %v2910_v55 = vld [vmem:[#allocation5 + $0x16c] ss:$16 sps:$4 sm:$0xff]  }
  0x75   :  { %979 = vmatpush2.bf16.msra.mxu1 %v2813_v56  ;;  %939 = vmatprep.subr.bf16.mxu0 %v2814_v57  ;;  %v2913_v56 = vld [vmem:[#allocation5 + $0x36c] ss:$16 sps:$4 sm:$0xff]   ;;  %v2908_v57 = vld [vmem:[#allocation5 + $0x168] ss:$16 sps:$4 sm:$0xff]  }
  0x76   :  { %980 = vmatprep.subr.bf16.mxu1 %v2816_v58  ;;  %v2911_v58 = vld [vmem:[#allocation5 + $0x368] ss:$16 sps:$4 sm:$0xff]  }
  0x78   :  { %940 = vmatpush2.bf16.msra.mxu0 %v2818_v59  ;;  %v2916_v59 = vld [vmem:[#allocation5 + $0x14c] ss:$16 sps:$4 sm:$0xff]  }
  0x79   :  { %981 = vmatpush2.bf16.msra.mxu1 %v2819_v60  ;;  %941 = vmatprep.subr.bf16.mxu0 %v2820_v61  ;;  %v2919_v60 = vld [vmem:[#allocation5 + $0x34c] ss:$16 sps:$4 sm:$0xff]   ;;  %v2914_v61 = vld [vmem:[#allocation5 + $0x148] ss:$16 sps:$4 sm:$0xff]  }
  0x7a   :  { %982 = vmatprep.subr.bf16.mxu1 %v2822_v62  ;;  %v2917_v62 = vld [vmem:[#allocation5 + $0x348] ss:$16 sps:$4 sm:$0xff]  }
  0x7c   :  { %942 = vmatpush2.bf16.msra.mxu0 %v2824_v63  ;;  %v2922_v63 = vld [vmem:[#allocation5 + $0x12c] ss:$16 sps:$4 sm:$0xff]  }
  0x7d   :  { %983 = vmatpush2.bf16.msra.mxu1 %v2825_v0  ;;  %943 = vmatprep.subr.bf16.mxu0 %v2826_v1  ;;  %v2925_v0 = vld [vmem:[#allocation5 + $0x32c] ss:$16 sps:$4 sm:$0xff]   ;;  %v2920_v1 = vld [vmem:[#allocation5 + $0x128] ss:$16 sps:$4 sm:$0xff]  }
  0x7e   :  { %984 = vmatprep.subr.bf16.mxu1 %v2828_v2  ;;  %v2923_v2 = vld [vmem:[#allocation5 + $0x328] ss:$16 sps:$4 sm:$0xff]  }
  0x80   :  { %944 = vmatpush2.bf16.msra.mxu0 %v2830_v3  ;;  %v2928_v3 = vld [vmem:[#allocation5 + $0x10c] ss:$16 sps:$4 sm:$0xff]  }
  0x81   :  { %985 = vmatpush2.bf16.msra.mxu1 %v2831_v4  ;;  %995 = vmatprep.subr.bf16.mxu0 %v2838_v5  ;;  %v2931_v4 = vld [vmem:[#allocation5 + $0x30c] ss:$16 sps:$4 sm:$0xff]   ;;  %v2926_v5 = vld [vmem:[#allocation5 + $0x108] ss:$16 sps:$4 sm:$0xff]  }
  0x82   :  { %1036 = vmatprep.subr.bf16.mxu1 %v2841_v6  ;;  %v2929_v6 = vld [vmem:[#allocation5 + $0x308] ss:$16 sps:$4 sm:$0xff]  }
  0x83   :  { %946 = vmatmul.mubr.bf16.vlgmr.msra.gmra.mxu0 %v3302_v7 }
  0x84   :  { %987 = vmatmul.mubr.bf16.vlgmr.msra.gmra.mxu1 %v3304_v8  ;;  %996 = vmatpush1.bf16.msra.mxu0 %v2836_v9  ;;  %v2934_v9 = vld [vmem:[#allocation7 + $0xac] ss:$12 sps:$4 sm:$0xff]  }
  0x85   :  { %1037 = vmatpush1.bf16.msra.mxu1 %v2839_v10  ;;  %997 = vmatprep.subr.bf16.mxu0 %v2844_v11  ;;  %v2932_v10 = vld [vmem:[#allocation7 + $0xa8] ss:$12 sps:$4 sm:$0xff]  }
  0x86   :  { %1038 = vmatprep.subr.bf16.mxu1 %v2847_v12  ;;  %1027 = vmatprep.mubr.bf16.mxu0 %v3299_v48  ;;  %v2901_v48 = vld [vmem:[#allocation5 + $0x3ac] ss:$16 sps:$4 sm:$0xff]   ;;  %v2937_v11 = vld [vmem:[#allocation7 + $0x94] ss:$12 sps:$4 sm:$0xff]  }
  0x87   :  { %1068 = vmatprep.mubr.bf16.mxu1 %v2338_v52  ;;  %v2907_v52 = vld [vmem:[#allocation5 + $0x38c] ss:$16 sps:$4 sm:$0xff]  }
  0x88   :  { %998 = vmatpush1.bf16.msra.mxu0 %v2842_v13  ;;  %v2935_v12 = vld [vmem:[#allocation7 + $0x90] ss:$12 sps:$4 sm:$0xff]  }
  0x89   :  { %1039 = vmatpush1.bf16.msra.mxu1 %v2845_v14  ;;  %999 = vmatprep.subr.bf16.mxu0 %v2850_v15  ;;  %v2940_v13 = vld [vmem:[#allocation7 + $0x7c] ss:$12 sps:$4 sm:$0xff]   ;;  %v2938_v14 = vld [vmem:[#allocation7 + $0x78] ss:$12 sps:$4 sm:$0xff]  }
  0x8a   :  { %1040 = vmatprep.subr.bf16.mxu1 %v2853_v16  ;;  %v2943_v15 = vld [vmem:[#allocation7 + $0x64] ss:$12 sps:$4 sm:$0xff]   ;;  %v2941_v16 = vld [vmem:[#allocation7 + $0x60] ss:$12 sps:$4 sm:$0xff]  }
  0x8c   :  { %1000 = vmatpush1.bf16.msra.mxu0 %v2848_v17  ;;  %v2982_v17 = vld [vmem:[#allocation7 + $0x22c] ss:$12 sps:$4 sm:$0xff]  }
  0x8d   :  { %1041 = vmatpush1.bf16.msra.mxu1 %v2851_v18  ;;  %1001 = vmatprep.subr.bf16.mxu0 %v2856_v19  ;;  %v2946_v18 = vld [vmem:[#allocation7 + $0x4c] ss:$12 sps:$4 sm:$0xff]   ;;  %v2980_v19 = vld [vmem:[#allocation7 + $0x228] ss:$12 sps:$4 sm:$0xff]  }
  0x8e   :  { %1042 = vmatprep.subr.bf16.mxu1 %v2859_v20  ;;  %v2985_v20 = vld [vmem:[#allocation7 + $0x210] ss:$12 sps:$4 sm:$0xff]  }
  0x90   :  { %1002 = vmatpush1.bf16.msra.mxu0 %v2854_v21  ;;  %v2949_v21 = vld [vmem:[#allocation7 + $0x34] ss:$12 sps:$4 sm:$0xff]  }
  0x91   :  { %1043 = vmatpush1.bf16.msra.mxu1 %v2857_v22  ;;  %1003 = vmatprep.subr.bf16.mxu0 %v2862_v23  ;;  %v2947_v22 = vld [vmem:[#allocation7 + $0x30] ss:$12 sps:$4 sm:$0xff]   ;;  %v2990_v23 = vld [vmem:[#allocation7 + $0x1f8] ss:$12 sps:$4 sm:$0xff]  }
  0x92   :  { %1044 = vmatprep.subr.bf16.mxu1 %v2865_v24  ;;  %v2992_v24 = vld [vmem:[#allocation7 + $0x1fc] ss:$12 sps:$4 sm:$0xff]  }
  0x94   :  { %1004 = vmatpush1.bf16.msra.mxu0 %v2860_v25  ;;  %v2952_v25 = vld [vmem:[#allocation7 + $0x1c] ss:$12 sps:$4 sm:$0xff]  }
  0x95   :  { %1045 = vmatpush1.bf16.msra.mxu1 %v2863_v26  ;;  %1005 = vmatprep.subr.bf16.mxu0 %v2868_v27  ;;  %v2950_v26 = vld [vmem:[#allocation7 + $0x18] ss:$12 sps:$4 sm:$0xff]   ;;  %v2995_v27 = vld [vmem:[#allocation7 + $0x1e0] ss:$12 sps:$4 sm:$0xff]  }
  0x96   :  { %1046 = vmatprep.subr.bf16.mxu1 %v2871_v28  ;;  %v2997_v28 = vld [vmem:[#allocation7 + $0x1e4] ss:$12 sps:$4 sm:$0xff]  }
  0x98   :  { %1006 = vmatpush1.bf16.msra.mxu0 %v2866_v29  ;;  %v2955_v29 = vld [vmem:[#allocation7 + $0x4] ss:$12 sps:$4 sm:$0xff]  }
  0x99   :  { %1047 = vmatpush1.bf16.msra.mxu1 %v2869_v30  ;;  %1007 = vmatprep.subr.bf16.mxu0 %v2874_v31  ;;  %v2953_v30 = vld [vmem:[#allocation7] ss:$12 sps:$4 sm:$0xff]   ;;  %v3000_v31 = vld [vmem:[#allocation7 + $0x1c8] ss:$12 sps:$4 sm:$0xff]  }
  0x9a   :  { %1048 = vmatprep.subr.bf16.mxu1 %v2877_v32  ;;  %v3002_v32 = vld [vmem:[#allocation7 + $0x1cc] ss:$12 sps:$4 sm:$0xff]  }
  0x9c   :  { %1008 = vmatpush1.bf16.msra.mxu0 %v2872_v33  ;;  %v2958_v33 = vld [vmem:[#allocation7 + $0x16c] ss:$12 sps:$4 sm:$0xff]  }
  0x9d   :  { %1049 = vmatpush1.bf16.msra.mxu1 %v2875_v34  ;;  %1009 = vmatprep.subr.bf16.mxu0 %v2880_v35  ;;  %v2956_v34 = vld [vmem:[#allocation7 + $0x168] ss:$12 sps:$4 sm:$0xff]   ;;  %v3005_v35 = vld [vmem:[#allocation7 + $0x1b0] ss:$12 sps:$4 sm:$0xff]  }
  0x9e   :  { %1050 = vmatprep.subr.bf16.mxu1 %v2883_v36  ;;  %v3007_v36 = vld [vmem:[#allocation7 + $0x1b4] ss:$12 sps:$4 sm:$0xff]  }
  0xa0   :  { %1010 = vmatpush1.bf16.msra.mxu0 %v2878_v37  ;;  %v2961_v37 = vld [vmem:[#allocation7 + $0x154] ss:$12 sps:$4 sm:$0xff]  }
  0xa1   :  { %1051 = vmatpush1.bf16.msra.mxu1 %v2881_v38  ;;  %1011 = vmatprep.subr.bf16.mxu0 %v2886_v39  ;;  %v2959_v38 = vld [vmem:[#allocation7 + $0x150] ss:$12 sps:$4 sm:$0xff]   ;;  %v3010_v39 = vld [vmem:[#allocation7 + $0x198] ss:$12 sps:$4 sm:$0xff]  }
  0xa2   :  { %1052 = vmatprep.subr.bf16.mxu1 %v2889_v40  ;;  %v3012_v40 = vld [vmem:[#allocation7 + $0x19c] ss:$12 sps:$4 sm:$0xff]  }
  0xa4   :  { %1012 = vmatpush2.bf16.msra.mxu0 %v2884_v41  ;;  %v2964_v41 = vld [vmem:[#allocation7 + $0x13c] ss:$12 sps:$4 sm:$0xff]  }
  0xa5   :  { %1053 = vmatpush2.bf16.msra.mxu1 %v2887_v42  ;;  %1013 = vmatprep.subr.bf16.mxu0 %v2892_v43  ;;  %v2962_v42 = vld [vmem:[#allocation7 + $0x138] ss:$12 sps:$4 sm:$0xff]   ;;  %v3015_v43 = vld [vmem:[#allocation7 + $0x180] ss:$12 sps:$4 sm:$0xff]  }
  0xa6   :  { %1054 = vmatprep.subr.bf16.mxu1 %v2895_v44  ;;  %v3017_v44 = vld [vmem:[#allocation7 + $0x184] ss:$12 sps:$4 sm:$0xff]  }
  0xa8   :  { %1014 = vmatpush2.bf16.msra.mxu0 %v2890_v45  ;;  %v2967_v45 = vld [vmem:[#allocation7 + $0x124] ss:$12 sps:$4 sm:$0xff]  }
  0xa9   :  { %1055 = vmatpush2.bf16.msra.mxu1 %v2893_v46  ;;  %1015 = vmatprep.subr.bf16.mxu0 %v2898_v47  ;;  %v2965_v46 = vld [vmem:[#allocation7 + $0x120] ss:$12 sps:$4 sm:$0xff]   ;;  %v3020_v47 = vld [vmem:[#allocation7 + $0x2e8] ss:$12 sps:$4 sm:$0xff]  }
  0xaa   :  { %1056 = vmatprep.subr.bf16.mxu1 %v2901_v48  ;;  %v3022_v48 = vld [vmem:[#allocation7 + $0x2ec] ss:$12 sps:$4 sm:$0xff]  }
  0xac   :  { %1016 = vmatpush2.bf16.msra.mxu0 %v2896_v49  ;;  %v2970_v49 = vld [vmem:[#allocation7 + $0x10c] ss:$12 sps:$4 sm:$0xff]  }
  0xad   :  { %1057 = vmatpush2.bf16.msra.mxu1 %v2899_v50  ;;  %1017 = vmatprep.subr.bf16.mxu0 %v2904_v51  ;;  %v3023_v50 = vld [vmem:[#allocation7 + $0x2d0] ss:$12 sps:$4 sm:$0xff]   ;;  %v3025_v51 = vld [vmem:[#allocation7 + $0x2d4] ss:$12 sps:$4 sm:$0xff]  }
  0xae   :  { %1058 = vmatprep.subr.bf16.mxu1 %v2907_v52  ;;  %v2968_v52 = vld [vmem:[#allocation7 + $0x108] ss:$12 sps:$4 sm:$0xff]  }
  0xb0   :  { %1018 = vmatpush2.bf16.msra.mxu0 %v2902_v53  ;;  %v3028_v53 = vld [vmem:[#allocation7 + $0x2bc] ss:$12 sps:$4 sm:$0xff]  }
  0xb1   :  { %1059 = vmatpush2.bf16.msra.mxu1 %v2905_v54  ;;  %1019 = vmatprep.subr.bf16.mxu0 %v2910_v55  ;;  %v2973_v54 = vld [vmem:[#allocation7 + $0xf4] ss:$12 sps:$4 sm:$0xff]   ;;  %v3026_v55 = vld [vmem:[#allocation7 + $0x2b8] ss:$12 sps:$4 sm:$0xff]  }
  0xb2   :  { %1060 = vmatprep.subr.bf16.mxu1 %v2913_v56  ;;  %v2971_v56 = vld [vmem:[#allocation7 + $0xf0] ss:$12 sps:$4 sm:$0xff]  }
  0xb4   :  { %1020 = vmatpush2.bf16.msra.mxu0 %v2908_v57  ;;  %v3031_v57 = vld [vmem:[#allocation7 + $0x2a4] ss:$12 sps:$4 sm:$0xff]  }
  0xb5   :  { %1061 = vmatpush2.bf16.msra.mxu1 %v2911_v58  ;;  %1021 = vmatprep.subr.bf16.mxu0 %v2916_v59  ;;  %v2976_v58 = vld [vmem:[#allocation7 + $0xdc] ss:$12 sps:$4 sm:$0xff]   ;;  %v3029_v59 = vld [vmem:[#allocation7 + $0x2a0] ss:$12 sps:$4 sm:$0xff]  }
  0xb6   :  { %1062 = vmatprep.subr.bf16.mxu1 %v2919_v60  ;;  %v2974_v60 = vld [vmem:[#allocation7 + $0xd8] ss:$12 sps:$4 sm:$0xff]  }
  0xb8   :  { %1022 = vmatpush2.bf16.msra.mxu0 %v2914_v61  ;;  %v3034_v61 = vld [vmem:[#allocation7 + $0x28c] ss:$12 sps:$4 sm:$0xff]  }
  0xb9   :  { %1063 = vmatpush2.bf16.msra.mxu1 %v2917_v62  ;;  %1023 = vmatprep.subr.bf16.mxu0 %v2922_v63  ;;  %v2979_v62 = vld [vmem:[#allocation7 + $0xc4] ss:$12 sps:$4 sm:$0xff]   ;;  %v3032_v63 = vld [vmem:[#allocation7 + $0x288] ss:$12 sps:$4 sm:$0xff]  }
  0xba   :  { %1064 = vmatprep.subr.bf16.mxu1 %v2925_v0  ;;  %v2977_v0 = vld [vmem:[#allocation7 + $0xc0] ss:$12 sps:$4 sm:$0xff]  }
  0xbc   :  { %1024 = vmatpush2.bf16.msra.mxu0 %v2920_v1  ;;  %v3037_v1 = vld [vmem:[#allocation7 + $0x274] ss:$12 sps:$4 sm:$0xff]  }
  0xbd   :  { %1065 = vmatpush2.bf16.msra.mxu1 %v2923_v2  ;;  %1025 = vmatprep.subr.bf16.mxu0 %v2928_v3  ;;  %v2983_v2 = vld [vmem:[#allocation7 + $0x170] ss:$12 sps:$4 sm:$0xff]  }
  0xbe   :  { %1066 = vmatprep.subr.bf16.mxu1 %v2931_v4  ;;  %v3035_v3 = vld [vmem:[#allocation7 + $0x270] ss:$12 sps:$4 sm:$0xff]  }
  0xbf   :  { %v3040_v4 = vld [vmem:[#allocation7 + $0x25c] ss:$12 sps:$4 sm:$0xff]  }
  0xc0   :  { %1026 = vmatpush2.bf16.msra.mxu0 %v2926_v5  ;;  %v3038_v5 = vld [vmem:[#allocation7 + $0x258] ss:$12 sps:$4 sm:$0xff]  }
  0xc1   :  { %1067 = vmatpush2.bf16.msra.mxu1 %v2929_v6  ;;  %1742 = vmatprep.subr.bf16.mxu0 %v2934_v9  ;;  %v3043_v6 = vld [vmem:[#allocation7 + $0x244] ss:$12 sps:$4 sm:$0xff]   ;;  %v3041_v9 = vld [vmem:[#allocation7 + $0x240] ss:$12 sps:$4 sm:$0xff]  }
  0xc2   :  { %1783 = vmatprep.subr.bf16.mxu1 %v2982_v17 }
  0xc3   :  { %1028 = vmatmul.mubr.bf16.vlgmr.msra.gmra.mxu0 %v3302_v7  ;;  %v2944_v7 = vld [vmem:[#allocation7 + $0x48] ss:$12 sps:$4 sm:$0xff]  }
  0xc4   :  { %1069 = vmatmul.mubr.bf16.vlgmr.msra.gmra.mxu1 %v3304_v8  ;;  %1743 = vmatpush1.bf16.msra.mxu0 %v2932_v10  ;;  %v2987_v8 = vld [vmem:[#allocation7 + $0x214] ss:$12 sps:$4 sm:$0xff]   ;;  %v3044_v10 = vld [vmem:[#allocation7 + $0x2f0] ss:$12 sps:$4 sm:$0xff]  }
  0xc5   :  { %1744 = vmatprep.subr.bf16.mxu0 %v2937_v11  ;;  %1784 = vmatpush1.bf16.msra.mxu1 %v2980_v19  ;;  %v239_v11 = vlaneseq }
  0xc6   :  { %1785 = vmatprep.subr.bf16.mxu1 %v2987_v8 }
  0xc8   :  { %1745 = vmatpush1.bf16.msra.mxu0 %v2935_v12  ;;  %v3311_v12 = vshrl.u32 %v239_v11, 7  ;;  %v3051_v11 = vld [vmem:[#allocation7 + $0x1e8] ss:$12 sps:$4 sm:$0xff]  }
  0xc9   :  { %1746 = vmatprep.subr.bf16.mxu0 %v2940_v13  ;;  %1786 = vmatpush1.bf16.msra.mxu1 %v2985_v20 }
  0xca   :  { %1787 = vmatprep.subr.bf16.mxu1 %v2992_v24  ;;  %v3314_v13 = vsub.s32 0, %v3311_v12 }
  0xcc   :  { %1747 = vmatpush1.bf16.msra.mxu0 %v2938_v14  ;;  %v237_v14 = vld [vmem:[%s3370_s2] sm:$0xf] }
  0xcd   :  { %1748 = vmatprep.subr.bf16.mxu0 %v2943_v15  ;;  %1788 = vmatpush1.bf16.msra.mxu1 %v2990_v23  ;;  %v245_v15 = vsub.s32 1, %v3311_v12 }
  0xce   :  { %1789 = vmatprep.subr.bf16.mxu1 %v2997_v28 }
  0xcf   :  { %v246_v17 = vrot.slane %v237_v14, %v245_v15 }
  0xd0   :  { %1749 = vmatpush1.bf16.msra.mxu0 %v2941_v16  ;;  %v242_v16 = vrot.slane %v237_v14, %v3314_v13 }
  0xd1   :  { %1750 = vmatprep.subr.bf16.mxu0 %v2946_v18  ;;  %1790 = vmatpush1.bf16.msra.mxu1 %v2995_v27 }
  0xd2   :  { %1791 = vmatprep.subr.bf16.mxu1 %v3002_v32 }
  0xd4   :  { %1751 = vmatpush1.bf16.msra.mxu0 %v2944_v7 }
  0xd5   :  { %1752 = vmatprep.subr.bf16.mxu0 %v2949_v21  ;;  %1792 = vmatpush1.bf16.msra.mxu1 %v3000_v31  ;;  %v2984_v31 = vld [vmem:[#allocation7 + $0xb0] ss:$12 sps:$4 sm:$0xff]  }
  0xd6   :  { %1793 = vmatprep.subr.bf16.mxu1 %v3007_v36  ;;  %v2994_v36 = vld [vmem:[#allocation7 + $0x80] ss:$12 sps:$4 sm:$0xff]  }
  0xd8   :  { %1753 = vmatpush1.bf16.msra.mxu0 %v2947_v22 }
  0xd9   :  { %1754 = vmatprep.subr.bf16.mxu0 %v2952_v25  ;;  %1794 = vmatpush1.bf16.msra.mxu1 %v3005_v35  ;;  %v2993_v35 = vld [vmem:[#allocation7 + $0x140] ss:$12 sps:$4 sm:$0xff]  }
  0xda   :  { %1795 = vmatprep.subr.bf16.mxu1 %v3012_v40  ;;  %v3004_v40 = vld [vmem:[#allocation7 + $0x50] ss:$12 sps:$4 sm:$0xff]  }
  0xdc   :  { %1755 = vmatpush1.bf16.msra.mxu0 %v2950_v26 }
  0xdd   :  { %1756 = vmatprep.subr.bf16.mxu0 %v2955_v29  ;;  %1796 = vmatpush1.bf16.msra.mxu1 %v3010_v39  ;;  %v3003_v39 = vld [vmem:[#allocation7 + $0x110] ss:$12 sps:$4 sm:$0xff]  }
  0xde   :  { %1797 = vmatprep.subr.bf16.mxu1 %v3017_v44  ;;  %v3014_v44 = vld [vmem:[#allocation7 + $0x20] ss:$12 sps:$4 sm:$0xff]  }
  0xe0   :  { %1757 = vmatpush1.bf16.msra.mxu0 %v2953_v30 }
  0xe1   :  { %1758 = vmatprep.subr.bf16.mxu0 %v2958_v33  ;;  %1798 = vmatpush1.bf16.msra.mxu1 %v3015_v43  ;;  %v2988_v33 = vld [vmem:[#allocation7 + $0x158] ss:$12 sps:$4 sm:$0xff]   ;;  %v3013_v43 = vld [vmem:[#allocation7 + $0xe0] ss:$12 sps:$4 sm:$0xff]  }
  0xe2   :  { %1799 = vmatprep.subr.bf16.mxu1 %v3022_v48  ;;  %v253_v48 = vsub.s32 3, %v3311_v12 }
  0xe4   :  { %1759 = vmatpush2.bf16.msra.mxu0 %v2956_v34  ;;  %v2989_v34 = vld [vmem:[#allocation7 + $0x98] ss:$12 sps:$4 sm:$0xff]  }
  0xe5   :  { %1760 = vmatprep.subr.bf16.mxu0 %v2961_v37  ;;  %1800 = vmatpush2.bf16.msra.mxu1 %v3020_v47  ;;  %v2998_v37 = vld [vmem:[#allocation7 + $0x128] ss:$12 sps:$4 sm:$0xff]   ;;  %v249_v47 = vsub.s32 2, %v3311_v12  ;;  %v3087_v12 = vld [vmem:[#allocation10 + $0x20] sm:$0xff]  }
  0xe6   :  { %1801 = vmatprep.subr.bf16.mxu1 %v3025_v51 }
  0xe8   :  { %1761 = vmatpush2.bf16.msra.mxu0 %v2959_v38  ;;  %v2999_v38 = vld [vmem:[#allocation7 + $0x68] ss:$12 sps:$4 sm:$0xff]  }
  0xe9   :  { %1762 = vmatprep.subr.bf16.mxu0 %v2964_v41  ;;  %1802 = vmatpush2.bf16.msra.mxu1 %v3023_v50  ;;  %v3008_v41 = vld [vmem:[#allocation7 + $0xf8] ss:$12 sps:$4 sm:$0xff]   ;;  %v254_v50 = vrot.slane %v237_v14, %v253_v48 }
  0xea   :  { %1803 = vmatprep.subr.bf16.mxu1 %v3028_v53 }
  0xec   :  { %1763 = vmatpush2.bf16.msra.mxu0 %v2962_v42  ;;  %v3009_v42 = vld [vmem:[#allocation7 + $0x38] ss:$12 sps:$4 sm:$0xff]  }
  0xed   :  { %1764 = vmatprep.subr.bf16.mxu0 %v2967_v45  ;;  %1804 = vmatpush2.bf16.msra.mxu1 %v3026_v55  ;;  %v3018_v45 = vld [vmem:[#allocation7 + $0xc8] ss:$12 sps:$4 sm:$0xff]  }
  0xee   :  { %1805 = vmatprep.subr.bf16.mxu1 %v3031_v57 }
  0xf0   :  { %1765 = vmatpush2.bf16.msra.mxu0 %v2965_v46  ;;  %v3019_v46 = vld [vmem:[#allocation7 + $0x8] ss:$12 sps:$4 sm:$0xff]  }
  0xf1   :  { %1766 = vmatprep.subr.bf16.mxu0 %v2970_v49  ;;  %1806 = vmatpush2.bf16.msra.mxu1 %v3029_v59  ;;  %v250_v49 = vrot.slane %v237_v14, %v249_v47  ;;  %v3052_v14 = vld [vmem:[#allocation7 + $0x290] ss:$12 sps:$4 sm:$0xff]  }
  0xf2   :  { %1807 = vmatprep.subr.bf16.mxu1 %v3034_v61 }
  0xf4   :  { %1767 = vmatpush2.bf16.msra.mxu0 %v2968_v52 }
  0xf5   :  { %1768 = vmatprep.subr.bf16.mxu0 %v2973_v54  ;;  %1808 = vmatpush2.bf16.msra.mxu1 %v3032_v63 }
  0xf6   :  { %1809 = vmatprep.subr.bf16.mxu1 %v3037_v1 }
  0xf8   :  { %1769 = vmatpush2.bf16.msra.mxu0 %v2971_v56 }
  0xf9   :  { %1770 = vmatprep.subr.bf16.mxu0 %v2976_v58  ;;  %1810 = vmatpush2.bf16.msra.mxu1 %v3035_v3 }
  0xfa   :  { %1811 = vmatprep.subr.bf16.mxu1 %v3040_v4  ;;  %v3046_v4 = vld [vmem:[#allocation7 + $0x2d8] ss:$12 sps:$4 sm:$0xff]  }
  0xfc   :  { %1771 = vmatpush2.bf16.msra.mxu0 %v2974_v60 }
  0xfd   :  { %1772 = vmatprep.subr.bf16.mxu0 %v2979_v62  ;;  %1812 = vmatpush2.bf16.msra.mxu1 %v3038_v5  ;;  %v3047_v5 = vld [vmem:[#allocation7 + $0x218] ss:$12 sps:$4 sm:$0xff]  }
  0xfe   :  { %1813 = vmatprep.subr.bf16.mxu1 %v3043_v6  ;;  %v3048_v6 = vld [vmem:[#allocation7 + $0x2c0] ss:$12 sps:$4 sm:$0xff]  }
 0x100   :  { %1773 = vmatpush2.bf16.msra.mxu0 %v2977_v0 }
 0x101   :  { %2599 = vmatprep.subr.bf16.mxu0 %v2983_v2  ;;  %1814 = vmatpush2.bf16.msra.mxu1 %v3041_v9  ;;  %v3045_v2 = vld [vmem:[#allocation7 + $0x230] ss:$12 sps:$4 sm:$0xff]   ;;  %v3049_v9 = vld [vmem:[#allocation7 + $0x200] ss:$12 sps:$4 sm:$0xff]  }
 0x102   :  { %2621 = vmatprep.subr.bf16.mxu1 %v3044_v10  ;;  %v3050_v10 = vld [vmem:[#allocation7 + $0x2a8] ss:$12 sps:$4 sm:$0xff]  }
 0x143   :  { %v947_v18 = vpop.f32.mrf.mxu0 }
 0x144   :  { %v988_v19 = vpop.f32.mrf.mxu1  ;;  %v948_v7 = vadd.f32 %v947_v18, %v242_v16  ;;  %v3053_v16 = vld [vmem:[#allocation7 + $0x1d0] ss:$12 sps:$4 sm:$0xff]   ;;  %v3055_v18 = vld [vmem:[#allocation7 + $0x1b8] ss:$12 sps:$4 sm:$0xff]  }
 0x145   :  { %v949_v20 = vpop.f32.mrf.mxu0 }
 0x146   :  { %v990_v8 = vpop.f32.mrf.mxu1  ;;  %v989_v21 = vadd.f32 %v988_v19, %v948_v7  ;;  %v950_v22 = vadd.f32 %v949_v20, %v246_v17  ;;  %v3054_v17 = vld [vmem:[#allocation7 + $0x278] ss:$12 sps:$4 sm:$0xff]   ;;  %v3056_v19 = vld [vmem:[#allocation7 + $0x260] ss:$12 sps:$4 sm:$0xff]   ;;  %v3058_v20 = vld [vmem:[#allocation7 + $0x248] ss:$12 sps:$4 sm:$0xff]  }
 0x147   :  { %v951_v23 = vpop.f32.mrf.mxu0  ;;  %v3057_v7 = vld [vmem:[#allocation7 + $0x1a0] ss:$12 sps:$4 sm:$0xff]  }
 0x148   :  { %v992_v24 = vpop.f32.mrf.mxu1  ;;  %v991_v25 = vadd.f32 %v990_v8, %v950_v22  ;;  %v1077_v26 = vmax.f32 %v989_v21, 0.0  ;;  %v3059_v8 = vld [vmem:[#allocation7 + $0x188] ss:$12 sps:$4 sm:$0xff]   ;;  %v3060_v21 = vld [vmem:[#allocation8 + $0x78] sm:$0xff]  }
 0x149   :  { %v952_v27 = vpop.f32.mrf.mxu0  ;;  %v3061_v22 = vld [vmem:[#allocation8 + $0x38] sm:$0xff]   ;;  %v3062_v23 = vld [vmem:[#allocation8 + $0x70] sm:$0xff]  }
 0x14a   :  { %v993_v28 = vpop.f32.mrf.mxu1  ;;  %v1078_v29 = vmax.f32 %v991_v25, 0.0  ;;  %v1081_v32 = vpack.c.bf16 %v1077_v26, %v1077_v26  ;;  %v3063_v24 = vld [vmem:[#allocation8 + $0x30] sm:$0xff]   ;;  %v3064_v25 = vld [vmem:[#allocation8 + $0x68] sm:$0xff]   ;;  %v3066_v27 = vld [vmem:[#allocation8 + $0x60] sm:$0xff]  }
 0x14b   :  { %v3065_v26 = vld [vmem:[#allocation8 + $0x28] sm:$0xff]   ;;  %v3067_v28 = vld [vmem:[#allocation8 + $0x20] sm:$0xff]  }
 0x14c   :  { %v1082_v30 = vpack.c.bf16 %v1078_v29, %v1078_v29  ;;  %v3068_v29 = vld [vmem:[#allocation8 + $0x58] sm:$0xff]  }
 0x14e   :  { %1774 = vmatprep.mubr.bf16.mxu0 %v1082_v30 }
 0x14f   :  { %1775 = vmatmul.mubr.bf16.vlgmr.msra.gmra.mxu0 %v1081_v32 }
 0x150   :  { %2600 = vmatpush3.bf16.msra.mxu0 %v2984_v31  ;;  %1856 = vmatprep.mubr.bf16.mxu0 %v1082_v30  ;;  %v3069_v30 = vld [vmem:[#allocation8 + $0x18] sm:$0xff]   ;;  %v3070_v31 = vld [vmem:[#allocation8 + $0x50] sm:$0xff]  }
 0x151   :  { %2601 = vmatprep.subr.bf16.mxu0 %v2988_v33  ;;  %v3072_v33 = vld [vmem:[#allocation8 + $0x48] sm:$0xff]  }
 0x154   :  { %2602 = vmatpush3.bf16.msra.mxu0 %v2989_v34  ;;  %v3073_v34 = vld [vmem:[#allocation8 + $0x8] sm:$0xff]  }
 0x155   :  { %2603 = vmatprep.subr.bf16.mxu0 %v2993_v35  ;;  %v3074_v35 = vld [vmem:[#allocation8 + $0x40] sm:$0xff]  }
 0x158   :  { %2604 = vmatpush3.bf16.msra.mxu0 %v2994_v36  ;;  %v3075_v36 = vld [vmem:[#allocation8] sm:$0xff]  }
 0x159   :  { %2605 = vmatprep.subr.bf16.mxu0 %v2998_v37  ;;  %v3076_v37 = vld [vmem:[#allocation8 + $0xb8] sm:$0xff]  }
 0x15c   :  { %2606 = vmatpush3.bf16.msra.mxu0 %v2999_v38  ;;  %v3213_v38 = vmov 0.0  }
 0x15d   :  { %2607 = vmatprep.subr.bf16.mxu0 %v3003_v39  ;;  %v3077_v39 = vld [vmem:[#allocation8 + $0xb0] sm:$0xff]  }
 0x160   :  { %2608 = vmatpush3.bf16.msra.mxu0 %v3004_v40  ;;  %v3078_v40 = vld [vmem:[#allocation8 + $0xa8] sm:$0xff]  }
 0x161   :  { %2609 = vmatprep.subr.bf16.mxu0 %v3008_v41  ;;  %v3079_v41 = vld [vmem:[#allocation8 + $0xa0] sm:$0xff]  }
 0x164   :  { %2610 = vmatpush3.bf16.msra.mxu0 %v3009_v42  ;;  %v3080_v42 = vld [vmem:[#allocation8 + $0x98] sm:$0xff]  }
 0x165   :  { %2611 = vmatprep.subr.bf16.mxu0 %v3013_v43  ;;  %v3081_v43 = vld [vmem:[#allocation8 + $0x90] sm:$0xff]  }
 0x168   :  { %2612 = vmatpush3.bf16.msra.mxu0 %v3014_v44  ;;  %v3082_v44 = vld [vmem:[#allocation8 + $0x88] sm:$0xff]  }
 0x169   :  { %2613 = vmatprep.subr.bf16.mxu0 %v3018_v45  ;;  %v3083_v45 = vld [vmem:[#allocation8 + $0x80] sm:$0xff]  }
 0x16c   :  { %2614 = vmatpush3.bf16.msra.mxu0 %v3019_v46 }
 0x16d   :  { %2643 = vmatprep.subr.bf16.mxu0 %v3060_v21  ;;  %v3086_v21 = vld [vmem:[#allocation10 + $0x28] sm:$0xff]  }
 0x16f   :  { %1857 = vmatmul.mubr.bf16.vlgmr.msra.gmra.mxu0 %v1081_v32  ;;  %v3071_v32 = vld [vmem:[#allocation8 + $0x10] sm:$0xff]  }
 0x170   :  { %2644 = vmatpush3.bf16.msra.mxu0 %v3061_v22  ;;  %v3089_v22 = vld [vmem:[#allocation10 + $0x10] sm:$0xff]  }
 0x171   :  { %2645 = vmatprep.subr.bf16.mxu0 %v3062_v23  ;;  %v3090_v23 = vld [vmem:[#allocation10 + $0x8] sm:$0xff]  }
 0x174   :  { %2646 = vmatpush3.bf16.msra.mxu0 %v3063_v24  ;;  %v3091_v24 = vld [vmem:[#allocation10] sm:$0xff]  }
 0x175   :  { %2647 = vmatprep.subr.bf16.mxu0 %v3064_v25 }
 0x178   :  { %2648 = vmatpush3.bf16.msra.mxu0 %v3065_v26 }
 0x179   :  { %2649 = vmatprep.subr.bf16.mxu0 %v3066_v27 }
 0x17c   :  { %2650 = vmatpush3.bf16.msra.mxu0 %v3067_v28 }
 0x17d   :  { %2651 = vmatprep.subr.bf16.mxu0 %v3068_v29 }
 0x180   :  { %2652 = vmatpush3.bf16.msra.mxu0 %v3069_v30  ;;  %v2563_v30 = vld [vmem:[%s3374_s6] ss:$0 sm:$0xff] }
 0x181   :  { %2653 = vmatprep.subr.bf16.mxu0 %v3070_v31 }
 0x183   :  { %v1029_v51 = vpop.f32.mrf.mxu0 }
 0x184   :  { %v1070_v52 = vpop.f32.mrf.mxu1  ;;  %v1030_v53 = vadd.f32 %v1029_v51, %v250_v49  ;;  %2654 = vmatpush3.bf16.msra.mxu0 %v3071_v32 }
 0x185   :  { %v1031_v54 = vpop.f32.mrf.mxu0  ;;  %2655 = vmatprep.subr.bf16.mxu0 %v3072_v33 }
 0x186   :  { %v1072_v55 = vpop.f32.mrf.mxu1  ;;  %v1071_v56 = vadd.f32 %v1070_v52, %v1030_v53  ;;  %v1032_v57 = vadd.f32 %v1031_v54, %v254_v50 }
 0x187   :  { %v1033_v58 = vpop.f32.mrf.mxu0 }
 0x188   :  { %v1074_v59 = vpop.f32.mrf.mxu1  ;;  %v1073_v60 = vadd.f32 %v1072_v55, %v1032_v57  ;;  %v1079_v61 = vmax.f32 %v1071_v56, 0.0  ;;  %2656 = vmatpush3.bf16.msra.mxu0 %v3073_v34  ;;  %v1213_v55 = vld [vmem:[%s3372_s4] sm:$0x7] }
 0x189   :  { %v1034_v62 = vpop.f32.mrf.mxu0  ;;  %2657 = vmatprep.subr.bf16.mxu0 %v3074_v35  ;;  %v1218_v56 = vrot.slane %v1213_v55, %v3314_v13  ;;  %v1222_v57 = vrot.slane %v1213_v55, %v245_v15  ;;  %v1226_v15 = vrot.slane %v1213_v55, %v249_v47  ;;  %v3088_v47 = vld [vmem:[#allocation10 + $0x18] sm:$0xff]  }
 0x18a   :  { %v1075_v63 = vpop.f32.mrf.mxu1  ;;  %v1080_v0 = vmax.f32 %v1073_v60, 0.0  ;;  %v1083_v3 = vpack.c.bf16 %v1079_v61, %v1079_v61 }
 0x18c   :  { %v1084_v1 = vpack.c.bf16 %v1080_v0, %v1080_v0  ;;  %2658 = vmatpush3.bf16.msra.mxu0 %v3075_v36 }
 0x18d   :  { %2703 = vmatprep.subr.bf16.mxu0 %v3213_v38 }
 0x18e   :  { %1815 = vmatprep.mubr.bf16.mxu1 %v1084_v1 }
 0x18f   :  { %1816 = vmatmul.mubr.bf16.vlgmr.msra.gmra.mxu1 %v1083_v3 }
 0x190   :  { %2622 = vmatpush3.bf16.msra.mxu1 %v3045_v2  ;;  %1896 = vmatprep.mubr.bf16.mxu1 %v1084_v1 }
 0x191   :  { %2623 = vmatprep.subr.bf16.mxu1 %v3046_v4 }
 0x194   :  { %2624 = vmatpush3.bf16.msra.mxu1 %v3047_v5 }
 0x195   :  { %2625 = vmatprep.subr.bf16.mxu1 %v3048_v6 }
 0x198   :  { %2626 = vmatpush3.bf16.msra.mxu1 %v3049_v9 }
 0x199   :  { %2627 = vmatprep.subr.bf16.mxu1 %v3050_v10 }
 0x19c   :  { %2628 = vmatpush3.bf16.msra.mxu1 %v3051_v11 }
 0x19d   :  { %2629 = vmatprep.subr.bf16.mxu1 %v3052_v14 }
 0x1a0   :  { %2630 = vmatpush3.bf16.msra.mxu1 %v3053_v16 }
 0x1a1   :  { %2631 = vmatprep.subr.bf16.mxu1 %v3054_v17 }
 0x1a4   :  { %2632 = vmatpush3.bf16.msra.mxu1 %v3055_v18 }
 0x1a5   :  { %2633 = vmatprep.subr.bf16.mxu1 %v3056_v19 }
 0x1a8   :  { %2634 = vmatpush3.bf16.msra.mxu1 %v3057_v7 }
 0x1a9   :  { %2635 = vmatprep.subr.bf16.mxu1 %v3058_v20  ;;  %v3084_v20 = vld [vmem:[#allocation10 + $0x38] sm:$0xff]  }
 0x1ac   :  { %2636 = vmatpush3.bf16.msra.mxu1 %v3059_v8  ;;  %v3085_v8 = vld [vmem:[#allocation10 + $0x30] sm:$0xff]  }
 0x1ad   :  { %2683 = vmatprep.subr.bf16.mxu1 %v3213_v38 }
 0x1af   :  { %1897 = vmatmul.mubr.bf16.vlgmr.msra.gmra.mxu1 %v1083_v3 }
 0x1b0   :  { %2684 = vmatpush3.bf16.msra.mxu1 %v3076_v37  ;;  %2699 = vmatprep.mubr.msk.bf16.mxu1 %vm3214_vm0, %v3213_v38 }
 0x1b1   :  { %2685 = vmatprep.subr.bf16.mxu1 %v3213_v38 }
 0x1b4   :  { %2686 = vmatpush3.bf16.msra.mxu1 %v3077_v39 }
 0x1b5   :  { %2687 = vmatprep.subr.bf16.mxu1 %v3213_v38 }
 0x1b8   :  { %2688 = vmatpush3.bf16.msra.mxu1 %v3078_v40 }
 0x1b9   :  { %2689 = vmatprep.subr.bf16.mxu1 %v3213_v38 }
 0x1bc   :  { %2690 = vmatpush3.bf16.msra.mxu1 %v3079_v41  ;;  %v2588_v41 = vld [vmem:[%s3376_s8] ss:$0 sm:$0xff] }
 0x1bd   :  { %2691 = vmatprep.subr.bf16.mxu1 %v3213_v38 }
 0x1c0   :  { %2692 = vmatpush3.bf16.msra.mxu1 %v3080_v42 }
 0x1c1   :  { %2693 = vmatprep.subr.bf16.mxu1 %v3213_v38 }
 0x1c4   :  { %2694 = vmatpush3.bf16.msra.mxu1 %v3081_v43 }
 0x1c5   :  { %2695 = vmatprep.subr.bf16.mxu1 %v3213_v38 }
 0x1c8   :  { %2696 = vmatpush3.bf16.msra.mxu1 %v3082_v44 }
 0x1c9   :  { %2697 = vmatprep.subr.bf16.mxu1 %v3213_v38 }
 0x1cc   :  { %2698 = vmatpush3.bf16.msra.mxu1 %v3083_v45 }
 0x20f   :  { %v1776_v46 = vpop.f32.mrf.mxu0 }
 0x210   :  { %v1777_v58 = vadd.f32 %v1776_v46, %v1218_v56 }
 0x211   :  { %v1778_v48 = vpop.f32.mrf.mxu0 }
 0x212   :  { %v1779_v60 = vadd.f32 %v1778_v48, %v1222_v57 }
 0x213   :  { %v1780_v49 = vpop.f32.mrf.mxu0 }
 0x215   :  { %v1781_v50 = vpop.f32.mrf.mxu0 }
 0x22f   :  { %v2615_v51 = vpop.f32.mrf.mxu0 }
 0x231   :  { %v2616_v52 = vpop.f32.mrf.mxu0 }
 0x232   :  { %v2617_v6 = vadd.f32 %v2616_v52, %v2615_v51  ;;  %v2597_v51 = vld [vmem:[#allocation2] ss:$0 sm:$0xff] }
 0x233   :  { %v2618_v53 = vpop.f32.mrf.mxu0 }
 0x234   :  { %v1859_v11 = vadd.f32 %v2617_v6, %v1226_v15 }
 0x235   :  { %v2619_v54 = vpop.f32.mrf.mxu0 }
 0x24f   :  { %v1817_v59 = vpop.f32.mrf.mxu1 }
 0x250   :  { %v1818_v61 = vadd.f32 %v1817_v59, %v1777_v58 }
 0x251   :  { %v1819_v62 = vpop.f32.mrf.mxu1 }
 0x252   :  { %v1820_v63 = vadd.f32 %v1819_v62, %v1779_v60  ;;  %v1904_v0 = vmax.f32 %v1818_v61, 0.0 }
 0x253   :  { %v1821_v1 = vpop.f32.mrf.mxu1 }
 0x254   :  { %v1905_v2 = vmax.f32 %v1820_v63, 0.0  ;;  %v1907_v5 = vpack.c.bf16 %v1904_v0, %v1904_v0 }
 0x255   :  { %v1822_v3 = vpop.f32.mrf.mxu1 }
 0x256   :  { %v1908_v4 = vpack.c.bf16 %v1905_v2, %v1905_v2 }
 0x258   :  { %2141 = vmatprep.mubr.bf16.mxu0 %v1908_v4 }
 0x259   :  { %2142 = vmatmul.mubr.bf16.vlgmr.msra.gmra.mxu0 %v1907_v5 }
 0x25a   :  { %2719 = vmatprep.mubr.msk.bf16.mxu0 %vm3214_vm0, %v3213_v38  ;;  %2704 = vmatpush3.bf16.msra.mxu0 %v3084_v20 }
 0x25b   :  { %2705 = vmatprep.subr.bf16.mxu0 %v3213_v38 }
 0x25e   :  { %2706 = vmatpush3.bf16.msra.mxu0 %v3085_v8 }
 0x25f   :  { %2707 = vmatprep.subr.bf16.mxu0 %v3213_v38 }
 0x262   :  { %2708 = vmatpush3.bf16.msra.mxu0 %v3086_v21 }
 0x263   :  { %2709 = vmatprep.subr.bf16.mxu0 %v3213_v38 }
 0x266   :  { %2710 = vmatpush3.bf16.msra.mxu0 %v3087_v12 }
 0x267   :  { %2711 = vmatprep.subr.bf16.mxu0 %v3213_v38 }
 0x26a   :  { %2712 = vmatpush3.bf16.msra.mxu0 %v3088_v47 }
 0x26b   :  { %2713 = vmatprep.subr.bf16.mxu0 %v3213_v38 }
 0x26e   :  { %2714 = vmatpush3.bf16.msra.mxu0 %v3089_v22 }
 0x26f   :  { %v2637_v9 = vpop.f32.mrf.mxu1  ;;  %2715 = vmatprep.subr.bf16.mxu0 %v3213_v38 }
 0x271   :  { %v2638_v10 = vpop.f32.mrf.mxu1 }
 0x272   :  { %v2639_v14 = vadd.f32 %v2638_v10, %v2637_v9  ;;  %2716 = vmatpush3.bf16.msra.mxu0 %v3090_v23 }
 0x273   :  { %v2640_v16 = vpop.f32.mrf.mxu1  ;;  %2717 = vmatprep.subr.bf16.mxu0 %v3213_v38  ;;  %v2303_v38 = vld [vmem:[%s3377_s9] sm:$0x1] }
 0x274   :  { %v1899_v17 = vadd.f32 %v2639_v14, %v1859_v11  ;;  %v2304_v40 = vunpack.c.l.bf16 %v2303_v38 }
 0x275   :  { %v2641_v18 = vpop.f32.mrf.mxu1 }
 0x276   :  { %v1906_v19 = vmax.f32 %v1899_v17, 0.0  ;;  %2718 = vmatpush3.bf16.msra.mxu0 %v3091_v24  ;;  %v2308_v44 = vrot.slane %v2304_v40, %v3314_v13 }
 0x278   :  { %v1909_v7 = vpack.c.bf16 %v1906_v19, %v1906_v19 }
 0x27a   :  { %2700 = vmatmul.mubr.bf16.vlgmr.msra.gmra.mxu1 %v1909_v7 }
 0x319   :  { %v2659_v25 = vpop.f32.mrf.mxu0 }
 0x31b   :  { %v2660_v26 = vpop.f32.mrf.mxu0 }
 0x31c   :  { %v2661_v29 = vadd.f32 %v2660_v26, %v2659_v25 }
 0x31d   :  { %v2662_v27 = vpop.f32.mrf.mxu0 }
 0x31e   :  { %v2144_v31 = vadd.f32 %v2661_v29, %v2563_v30 }
 0x31f   :  { %v2663_v28 = vpop.f32.mrf.mxu0 }
 0x33a   :  { %v2183_v32 = vpop.f32.mrf.mxu1 }
 0x33b   :  { %v2184_v33 = vadd.f32 %v2183_v32, %v2144_v31 }
 0x33c   :  { %v2701_v34 = vpop.f32.mrf.mxu1 }
 0x33d   :  { %v2189_v35 = vmax.f32 %v2184_v33, 0.0 }
 0x33e   :  { %v2186_v36 = vpop.f32.mrf.mxu1 }
 0x33f   :  { %v2190_v37 = vpack.c.bf16 %v2189_v35, %v2189_v35 }
 0x340   :  { %v2702_v39 = vpop.f32.mrf.mxu1 }
 0x341   :  { %2720 = vmatmul.mubr.bf16.vlgmr.msra.gmra.mxu0 %v2190_v37 }
 0x401   :  { %v2296_v42 = vpop.f32.mrf.mxu0 }
 0x402   :  { %v2297_v43 = vadd.f32 %v2588_v41, %v2296_v42 }
 0x403   :  { %v2721_v45 = vpop.f32.mrf.mxu0 }
 0x404   :  { %v2302_v46 = vmax.f32 %v2297_v43, 0.0 }
 0x405   :  { %v2299_v48 = vpop.f32.mrf.mxu0 }
 0x406   :  { %v2309_v49 = vmul.f32 %v2308_v44, %v2302_v46 }
 0x407   :  { %v2722_v50 = vpop.f32.mrf.mxu0 }
 0x408   :  { %2310 = vadd.xlane.f32.xlu0 %v2309_v49 }
 0x491   :  { %v2311_v52 = vpop.xlane.xlu0 %2310 }
 0x492   :  { %v2319_v53 = vadd.f32 %v2597_v51, %v2311_v52 }
 0x494   :  { %v2598_v54 = vmul.f32 -1.442695, %v2319_v53 }
 0x496   :  { %3092 = vpow2.f32 %v2598_v54 }
 0x4a3   :  { %v3093_v55 = vpop.eup %3092 }
 0x4a4   :  { %v2323_v56 = vadd.f32 1.0, %v3093_v55 }
 0x4a6   :  { %3094 = vrcp.f32 %v2323_v56 }
 0x4b3   :  { %v3095_v57 = vpop.eup %3094 }
 0x4b4   :  { %2327 = vst.msk [vmem:[%s3379_s11] sm:$0xff] %vm2326_vm1, %v3095_v57 }
 0x4b5   :  { %2332 = vsyncpa [#allocation4], 1 }
 0x4b6   :  { %2333 = vsyncpa [#allocation6], 1 }
 0x4b7   :  { %2334 = vsyncpa [#allocation9], 1 }

</bundles_post_ra>
